<compile_context>
chip_gen: v7x
topology: tpu7x:2x2x1
jax: 0.10.0
libtpu: 0.0.40
codegen_flags: <defaults>
</compile_context>

<pallas_src>
import math
from functools import partial

import jax
import jax.numpy as jnp
from jax.experimental import pallas as pl
from jax.experimental.pallas import tpu as pltpu


VMEM_LIMIT = 32 * 1024 * 1024  # explicit, safe on v5e/v6e/v7x


def _tile(d, cap):
    """Largest clean tile: use `cap` if it evenly divides d, else the full dim."""
    return cap if (d > cap and d % cap == 0) else d


# ----------------------------------------------------------------------------
# Tiled linear kernel: bf16 MXU matmul + f32 accumulator, fused bias/ReLU/residual
# ----------------------------------------------------------------------------
def _linear_kernel(x_ref, w_ref, b_ref, *rest, activation, has_residual):
    if has_residual:
        r_ref, o_ref, acc_ref = rest
    else:
        o_ref, acc_ref = rest
        r_ref = None

    k = pl.program_id(2)

    @pl.when(k == 0)
    def _():
        acc_ref[...] = jnp.zeros_like(acc_ref)

    acc_ref[...] += jnp.dot(x_ref[...], w_ref[...],
                            preferred_element_type=jnp.float32)

    @pl.when(k == pl.num_programs(2) - 1)
    def _():
        y = acc_ref[...] + b_ref[...]          # f32 epilogue
        if activation == "relu":
            y = jnp.maximum(y, 0.0)
        if r_ref is not None:
            y = y + r_ref[...]                 # fused residual add
        o_ref[...] = y.astype(o_ref.dtype)


def linear(x, w, b, activation="none", residual=None, out_dtype=jnp.float32,
           tm_cap=256, tn_cap=512, tk_cap=512):
    """x: [M,K], w: [K,N], b: [N] -> [M,N].  bf16 MXU operands, f32 accumulate."""
    M, K = x.shape
    N = w.shape[1]
    tm, tn, tk = _tile(M, tm_cap), _tile(N, tn_cap), _tile(K, tk_cap)
    grid = (M // tm, N // tn, K // tk)

    in_specs = [
        pl.BlockSpec((tm, tk), lambda i, j, k: (i, k)),
        pl.BlockSpec((tk, tn), lambda i, j, k: (k, j)),
        pl.BlockSpec((1, tn), lambda i, j, k: (0, j)),
    ]
    args = [x.astype(jnp.bfloat16), w.astype(jnp.bfloat16),
            b.reshape(1, N).astype(jnp.float32)]
    if residual is not None:
        in_specs.append(pl.BlockSpec((tm, tn), lambda i, j, k: (i, j)))
        args.append(residual.astype(jnp.float32))

    return pl.pallas_call(
        partial(_linear_kernel, activation=activation,
                has_residual=residual is not None),
        out_shape=jax.ShapeDtypeStruct((M, N), out_dtype),
        grid=grid,
        in_specs=in_specs,
        out_specs=pl.BlockSpec((tm, tn), lambda i, j, k: (i, j)),
        scratch_shapes=[pltpu.VMEM((tm, tn), jnp.float32)],
        compiler_params=pltpu.CompilerParams(
            dimension_semantics=("parallel", "parallel", "arbitrary"),
            vmem_limit_bytes=VMEM_LIMIT,
        ),
    )(*args)


# ----------------------------------------------------------------------------
# Row-tiled LayerNorm
# ----------------------------------------------------------------------------
def _layernorm_kernel(x_ref, g_ref, b_ref, o_ref, *, eps):
    x = x_ref[...]
    mu = jnp.mean(x, axis=-1, keepdims=True)
    var = jnp.mean((x - mu) ** 2, axis=-1, keepdims=True)
    inv = jax.lax.rsqrt(var + eps)
    o_ref[...] = ((x - mu) * inv * g_ref[...] + b_ref[...]).astype(o_ref.dtype)


def layer_norm(x, gamma, beta, eps=1e-6, out_dtype=jnp.float32):
    """x: [B,S,D] -> [B,S,D]; per-row reduction in-kernel.  eps=1e-6 matches the
    reference repo's custom LayerNormalization."""
    B, S, D = x.shape
    M = B * S
    tm = _tile(M, 512)
    out = pl.pallas_call(
        partial(_layernorm_kernel, eps=eps),
        out_shape=jax.ShapeDtypeStruct((M, D), out_dtype),
        grid=(M // tm,),
        in_specs=[
            pl.BlockSpec((tm, D), lambda i: (i, 0)),
            pl.BlockSpec((1, D), lambda i: (0, 0)),
            pl.BlockSpec((1, D), lambda i: (0, 0)),
        ],
        out_specs=pl.BlockSpec((tm, D), lambda i: (i, 0)),
        compiler_params=pltpu.CompilerParams(
            dimension_semantics=("parallel",),
            vmem_limit_bytes=VMEM_LIMIT,
        ),
    )(x.reshape(M, D), gamma.reshape(1, D), beta.reshape(1, D))
    return out.reshape(B, S, D)


# ----------------------------------------------------------------------------
# Attention: all heads per (batch, q-tile) grid step, compact mask, in-kernel
# head slicing along the lane axis (no HBM head transposes).
# ----------------------------------------------------------------------------
def _mha_kernel(q_ref, k_ref, v_ref, m_ref, o_ref, *, num_heads, scale):
    q = q_ref[...]                     # [tq, D]  bf16
    k = k_ref[...]                     # [Sk, D]  bf16
    v = v_ref[...]                     # [Sk, D]  bf16
    valid = m_ref[...] != 0.0          # [tq, Sk] bool
    D = q.shape[-1]
    Dh = D // num_heads

    outs = []
    for h in range(num_heads):         # unrolled at trace time
        lo, hi = h * Dh, (h + 1) * Dh
        s = jax.lax.dot_general(
            q[:, lo:hi], k[:, lo:hi], (((1,), (1,)), ((), ())),
            preferred_element_type=jnp.float32) * scale
        s = jnp.where(valid, s, -1e9)                    # masked_fill(mask==0, -1e9)
        s = s - jnp.max(s, axis=-1, keepdims=True)       # stable softmax (f32)
        p = jnp.exp(s)
        p = p * pl.reciprocal(jnp.sum(p, axis=-1, keepdims=True), approx=True)
        outs.append(jnp.dot(p.astype(v.dtype), v[:, lo:hi],
                            preferred_element_type=jnp.float32))
    o_ref[...] = jnp.concatenate(outs, axis=-1).astype(o_ref.dtype)


def attention(q, k, v, mask, num_heads):
    """q: [B,Sq,D], k/v: [B,Sk,D], mask broadcastable to [B,1,Sq,Sk] -> [B,Sq,D] bf16."""
    B, Sq, D = q.shape
    Sk = k.shape[1]
    Dh = D // num_heads
    tq = _tile(Sq, 256)
    # Compact mask: no head-dimension broadcast materialized in HBM.
    mask3 = jnp.broadcast_to(mask, (B, 1, Sq, Sk)).reshape(B, Sq, Sk).astype(jnp.float32)

    return pl.pallas_call(
        partial(_mha_kernel, num_heads=num_heads, scale=1.0 / math.sqrt(Dh)),
        out_shape=jax.ShapeDtypeStruct((B, Sq, D), jnp.bfloat16),
        grid=(B, Sq // tq),
        in_specs=[
            pl.BlockSpec((None, tq, D), lambda b, i: (b, i, 0)),
            pl.BlockSpec((None, Sk, D), lambda b, i: (b, 0, 0)),
            pl.BlockSpec((None, Sk, D), lambda b, i: (b, 0, 0)),
            pl.BlockSpec((None, tq, Sk), lambda b, i: (b, i, 0)),
        ],
        out_specs=pl.BlockSpec((None, tq, D), lambda b, i: (b, i, 0)),
        compiler_params=pltpu.CompilerParams(
            dimension_semantics=("parallel", "parallel"),
            vmem_limit_bytes=VMEM_LIMIT,
        ),
    )(q.astype(jnp.bfloat16), k.astype(jnp.bfloat16), v.astype(jnp.bfloat16), mask3)


# ----------------------------------------------------------------------------
# Multi-head attention blocks (fused QKV / KV projections, fused residual)
# ----------------------------------------------------------------------------
def multi_head_self_attention(x_norm, mask, residual, p, num_heads):
    B, S, D = x_norm.shape
    qkv = linear(x_norm.reshape(B * S, D), p["w_qkv"], p["b_qkv"],
                 out_dtype=jnp.bfloat16).reshape(B, S, 3 * D)
    q, k, v = qkv[..., :D], qkv[..., D:2 * D], qkv[..., 2 * D:]
    ctx = attention(q, k, v, mask, num_heads)                       # [B,S,D] bf16
    out = linear(ctx.reshape(B * S, D), p["wo"], p["bo"],
                 residual=residual.reshape(B * S, D))               # residual fused
    return out.reshape(B, S, D)


def multi_head_cross_attention(x_norm, memory, mask, residual, p, num_heads):
    B, Sq, D = x_norm.shape
    Sk = memory.shape[1]
    q = linear(x_norm.reshape(B * Sq, D), p["wq"], p["bq"],
               out_dtype=jnp.bfloat16).reshape(B, Sq, D)
    kv = linear(memory.reshape(B * Sk, D), p["w_kv"], p["b_kv"],
                out_dtype=jnp.bfloat16).reshape(B, Sk, 2 * D)
    k, v = kv[..., :D], kv[..., D:]
    ctx = attention(q, k, v, mask, num_heads)
    out = linear(ctx.reshape(B * Sq, D), p["wo"], p["bo"],
                 residual=residual.reshape(B * Sq, D))
    return out.reshape(B, Sq, D)


def feed_forward(x_norm, residual, p):
    B, S, D = x_norm.shape
    h = linear(x_norm.reshape(B * S, D), p["w1"], p["b1"],
               activation="relu", out_dtype=jnp.bfloat16)
    out = linear(h, p["w2"], p["b2"], residual=residual.reshape(B * S, D))
    return out.reshape(B, S, D)


# ----------------------------------------------------------------------------
# Model composition
# ----------------------------------------------------------------------------
def encoder_layer(x, src_mask, p, num_heads):
    h = layer_norm(x, p["ln1_g"], p["ln1_b"], out_dtype=jnp.bfloat16)
    x = multi_head_self_attention(h, src_mask, x, p["self_attn"], num_heads)
    h = layer_norm(x, p["ln2_g"], p["ln2_b"], out_dtype=jnp.bfloat16)
    x = feed_forward(h, x, p["ff"])
    return x


def decoder_layer(x, memory, src_mask, tgt_mask, p, num_heads):
    h = layer_norm(x, p["ln1_g"], p["ln1_b"], out_dtype=jnp.bfloat16)
    x = multi_head_self_attention(h, tgt_mask, x, p["self_attn"], num_heads)
    h = layer_norm(x, p["ln2_g"], p["ln2_b"], out_dtype=jnp.bfloat16)
    x = multi_head_cross_attention(h, memory, src_mask, x, p["cross_attn"], num_heads)
    h = layer_norm(x, p["ln3_g"], p["ln3_b"], out_dtype=jnp.bfloat16)
    x = feed_forward(h, x, p["ff"])
    return x


def transformer_forward(params, src, tgt, src_mask, tgt_mask, cfg):
    D, H = cfg["d_model"], cfg["num_heads"]
    pe = params["pe"]

    # encode: InputEmbeddings (x * sqrt(d_model)) + PositionalEmbeddings
    x = jnp.take(params["src_emb"], src, axis=0) * math.sqrt(D)
    x = x + pe[: src.shape[1]][None]
    for lp in params["enc_layers"]:
        x = encoder_layer(x, src_mask, lp, H)
    memory = layer_norm(x, params["enc_ln_g"], params["enc_ln_b"])

    # decode
    y = jnp.take(params["tgt_emb"], tgt, axis=0) * math.sqrt(D)
    y = y + pe[: tgt.shape[1]][None]
    for lp in params["dec_layers"]:
        y = decoder_layer(y, memory, src_mask, tgt_mask, lp, H)
    y = layer_norm(y, params["dec_ln_g"], params["dec_ln_b"])

    # project: Linear(d_model, tgt_vocab)
    B, St, _ = y.shape
    logits = linear(y.reshape(B * St, D), params["w_proj"], params["b_proj"])
    return logits.reshape(B, St, -1)


# ----------------------------------------------------------------------------
# Deterministic parameter initialization (synthetic weights)
# ----------------------------------------------------------------------------
def sinusoidal_pe(max_len, d_model):
    pos = jnp.arange(max_len, dtype=jnp.float32)[:, None]
    div = jnp.exp(
        jnp.arange(0, d_model, 2, dtype=jnp.float32) * (-math.log(10000.0) / d_model)
    )
    pe = jnp.zeros((max_len, d_model), jnp.float32)
    pe = pe.at[:, 0::2].set(jnp.sin(pos * div))
    pe = pe.at[:, 1::2].set(jnp.cos(pos * div))
    return pe


def init_params(key, cfg):
    D, F = cfg["d_model"], cfg["d_ff"]
    keys = iter(jax.random.split(key, 512))

    def nrm(shape):
        return (0.02 * jax.random.normal(next(keys), shape)).astype(jnp.float32)

    def self_attn_p():
        # wq|wk|wv fused into a single [D, 3D] projection
        return {"w_qkv": nrm((D, 3 * D)), "b_qkv": jnp.zeros((3 * D,), jnp.float32),
                "wo": nrm((D, D)), "bo": jnp.zeros((D,), jnp.float32)}

    def cross_attn_p():
        # wk|wv fused into a single [D, 2D] projection (shared K/V input = memory)
        return {"wq": nrm((D, D)), "bq": jnp.zeros((D,), jnp.float32),
                "w_kv": nrm((D, 2 * D)), "b_kv": jnp.zeros((2 * D,), jnp.float32),
                "wo": nrm((D, D)), "bo": jnp.zeros((D,), jnp.float32)}

    def ff_p():
        return {"w1": nrm((D, F)), "b1": jnp.zeros((F,), jnp.float32),
                "w2": nrm((F, D)), "b2": jnp.zeros((D,), jnp.float32)}

    def ln():
        return jnp.ones((D,), jnp.float32), jnp.zeros((D,), jnp.float32)

    enc_layers, dec_layers = [], []
    for _ in range(cfg["num_layers"]):
        g1, b1 = ln(); g2, b2 = ln()
        enc_layers.append({"self_attn": self_attn_p(), "ff": ff_p(),
                           "ln1_g": g1, "ln1_b": b1, "ln2_g": g2, "ln2_b": b2})
    for _ in range(cfg["num_layers"]):
        g1, b1 = ln(); g2, b2 = ln(); g3, b3 = ln()
        dec_layers.append({"self_attn": self_attn_p(), "cross_attn": cross_attn_p(),
                           "ff": ff_p(),
                           "ln1_g": g1, "ln1_b": b1, "ln2_g": g2, "ln2_b": b2,
                           "ln3_g": g3, "ln3_b": b3})

    eg, eb = ln()
    dg, db = ln()
    return {
        "src_emb": nrm((cfg["src_vocab"], D)),
        "tgt_emb": nrm((cfg["tgt_vocab"], D)),
        "pe": sinusoidal_pe(cfg["max_len"], D),
        "enc_layers": enc_layers,
        "dec_layers": dec_layers,
        "enc_ln_g": eg, "enc_ln_b": eb,
        "dec_ln_g": dg, "dec_ln_b": db,
        "w_proj": nrm((D, cfg["tgt_vocab"])),
        "b_proj": jnp.zeros((cfg["tgt_vocab"],), jnp.float32),
    }


# ----------------------------------------------------------------------------
if __name__ == "__main__":
    cfg = dict(src_vocab=48, tgt_vocab=64, d_model=32, num_heads=4,
               d_ff=64, num_layers=2, max_len=64)

    key = jax.random.PRNGKey(0)
    pkey, skey, tkey = jax.random.split(key, 3)
    params = init_params(pkey, cfg)

    B, Ss, St = 2, 8, 8
    src = jax.random.randint(skey, (B, Ss), 0, cfg["src_vocab"], dtype=jnp.int32)
    tgt = jax.random.randint(tkey, (B, St), 0, cfg["tgt_vocab"], dtype=jnp.int32)

    src_mask = jnp.ones((B, 1, 1, Ss), jnp.float32)                 # padding mask (all valid)
    tgt_mask = jnp.broadcast_to(
        jnp.tril(jnp.ones((St, St), jnp.float32))[None, None], (B, 1, St, St)
    )                                                               # causal mask

    fwd = jax.jit(partial(transformer_forward, cfg=cfg))
    out = fwd(params, src, tgt, src_mask, tgt_mask)
    out = jax.block_until_ready(out)
    assert out.shape == (B, St, cfg["tgt_vocab"]), out.shape
    assert bool(jnp.all(jnp.isfinite(out)))
    print("KERNEL_OK")
</pallas_src>

<mosaic_0001>
module attributes {stable_mosaic.version = 11 : i64} {
  func.func @_layernorm_kernel(%arg0: i32, %arg1: memref<16x32xf32, #tpu.memory_space<vmem>>, %arg2: memref<1x32xf32, #tpu.memory_space<vmem>>, %arg3: memref<1x32xf32, #tpu.memory_space<vmem>>, %arg4: memref<16x32xbf16, #tpu.memory_space<vmem>>) attributes {dimension_semantics = [#tpu.dimension_semantics<parallel>], iteration_bounds = array<i64: 1>, scalar_prefetch = 0 : i64, scratch_operands = 0 : i64, tpu.core_type = #tpu.core_type<tc>, window_params = [{transform_indices = @transform_0, window_bounds = array<i64: 16, 32>}, {pipeline_mode = #tpu.pipeline_mode<synchronous>, transform_indices = @transform_1, window_bounds = array<i64: 1, 32>}, {pipeline_mode = #tpu.pipeline_mode<synchronous>, transform_indices = @transform_2, window_bounds = array<i64: 1, 32>}, {transform_indices = @transform_3, window_bounds = array<i64: 16, 32>}]} {
    %c0 = arith.constant 0 : index
    %c0_0 = arith.constant 0 : index
    %0 = vector.load %arg1[%c0, %c0_0] : memref<16x32xf32, #tpu.memory_space<vmem>>, vector<16x32xf32>
    %cst = arith.constant dense<0.000000e+00> : vector<16xf32>
    %1 = vector.multi_reduction <add>, %0, %cst [1] : vector<16x32xf32> to vector<16xf32>
    %2 = vector.shape_cast %1 : vector<16xf32> to vector<16x1xf32>
    %cst_1 = arith.constant 3.200000e+01 : f32
    %3 = vector.broadcast %cst_1 : f32 to vector<16x1xf32>
    %4 = arith.divf %2, %3 : vector<16x1xf32>
    %5 = vector.broadcast %4 : vector<16x1xf32> to vector<16x32xf32>
    %6 = arith.subf %0, %5 : vector<16x32xf32>
    %7 = arith.mulf %6, %6 : vector<16x32xf32>
    %cst_2 = arith.constant dense<0.000000e+00> : vector<16xf32>
    %8 = vector.multi_reduction <add>, %7, %cst_2 [1] : vector<16x32xf32> to vector<16xf32>
    %9 = vector.shape_cast %8 : vector<16xf32> to vector<16x1xf32>
    %cst_3 = arith.constant 3.200000e+01 : f32
    %10 = vector.broadcast %cst_3 : f32 to vector<16x1xf32>
    %11 = arith.divf %9, %10 : vector<16x1xf32>
    %cst_4 = arith.constant 9.99999997E-7 : f32
    %12 = vector.broadcast %cst_4 : f32 to vector<16x1xf32>
    %13 = arith.addf %11, %12 : vector<16x1xf32>
    %14 = math.rsqrt %13 : vector<16x1xf32>
    %15 = vector.broadcast %4 : vector<16x1xf32> to vector<16x32xf32>
    %16 = arith.subf %0, %15 : vector<16x32xf32>
    %17 = vector.broadcast %14 : vector<16x1xf32> to vector<16x32xf32>
    %18 = arith.mulf %16, %17 : vector<16x32xf32>
    %c0_5 = arith.constant 0 : index
    %c0_6 = arith.constant 0 : index
    %19 = vector.load %arg2[%c0_5, %c0_6] : memref<1x32xf32, #tpu.memory_space<vmem>>, vector<1x32xf32>
    %20 = vector.broadcast %19 : vector<1x32xf32> to vector<16x32xf32>
    %21 = arith.mulf %18, %20 : vector<16x32xf32>
    %c0_7 = arith.constant 0 : index
    %c0_8 = arith.constant 0 : index
    %22 = vector.load %arg3[%c0_7, %c0_8] : memref<1x32xf32, #tpu.memory_space<vmem>>, vector<1x32xf32>
    %23 = vector.broadcast %22 : vector<1x32xf32> to vector<16x32xf32>
    %24 = arith.addf %21, %23 : vector<16x32xf32>
    %25 = arith.truncf %24 : vector<16x32xf32> to vector<16x32xbf16>
    %c0_9 = arith.constant 0 : index
    %c0_10 = arith.constant 0 : index
    %26 = vector.load %arg4[%c0_9, %c0_10] : memref<16x32xbf16, #tpu.memory_space<vmem>>, vector<16x32xbf16>
    tpu.vector_store %arg4[%c0_9, %c0_10], %25 {strides = array<i32>} : memref<16x32xbf16, #tpu.memory_space<vmem>>, vector<16x32xbf16>,
    return
  }
  func.func @transform_0(%arg0: i32) -> (i32, i32) {
    %c0_i32 = arith.constant 0 : i32
    %c0_i32_0 = arith.constant 0 : i32
    return %arg0, %c0_i32 : i32, i32
  }
  func.func @transform_1(%arg0: i32) -> (i32, i32) {
    %c0_i32 = arith.constant 0 : i32
    %c0_i32_0 = arith.constant 0 : i32
    %c0_i32_1 = arith.constant 0 : i32
    return %c0_i32, %c0_i32_0 : i32, i32
  }
  func.func @transform_2(%arg0: i32) -> (i32, i32) {
    %c0_i32 = arith.constant 0 : i32
    %c0_i32_0 = arith.constant 0 : i32
    %c0_i32_1 = arith.constant 0 : i32
    return %c0_i32, %c0_i32_0 : i32, i32
  }
  func.func @transform_3(%arg0: i32) -> (i32, i32) {
    %c0_i32 = arith.constant 0 : i32
    %c0_i32_0 = arith.constant 0 : i32
    return %arg0, %c0_i32 : i32, i32
  }
}

module attributes {stable_mosaic.version = 11 : i64} {
  func.func @_linear_kernel(%arg0: i32, %arg1: i32, %arg2: i32, %arg3: memref<16x32xbf16, #tpu.memory_space<vmem>>, %arg4: memref<32x96xbf16, #tpu.memory_space<vmem>>, %arg5: memref<1x96xf32, #tpu.memory_space<vmem>>, %arg6: memref<16x96xbf16, #tpu.memory_space<vmem>>, %arg7: memref<16x96xf32, #tpu.memory_space<vmem>>) attributes {dimension_semantics = [#tpu.dimension_semantics<parallel>, #tpu.dimension_semantics<parallel>, #tpu.dimension_semantics<arbitrary>], iteration_bounds = array<i64: 1, 1, 1>, scalar_prefetch = 0 : i64, scratch_operands = 1 : i64, tpu.core_type = #tpu.core_type<tc>, window_params = [{transform_indices = @transform_0, window_bounds = array<i64: 16, 32>}, {transform_indices = @transform_1, window_bounds = array<i64: 32, 96>}, {transform_indices = @transform_2, window_bounds = array<i64: 1, 96>}, {transform_indices = @transform_3, window_bounds = array<i64: 16, 96>}]} {
    %c0_i32 = arith.constant 0 : i32
    %0 = arith.cmpi eq, %arg2, %c0_i32 : i32
    %1 = arith.extui %0 : i1 to i32
    %c0_i32_0 = arith.constant 0 : i32
    %2 = arith.cmpi ne, %1, %c0_i32_0 : i32
    scf.if %2 {
      %cst_10 = arith.constant 0.000000e+00 : f32
      %12 = vector.broadcast %cst_10 : f32 to vector<16x96xf32>
      %c0_11 = arith.constant 0 : index
      %c0_12 = arith.constant 0 : index
      %13 = vector.load %arg7[%c0_11, %c0_12] : memref<16x96xf32, #tpu.memory_space<vmem>>, vector<16x96xf32>
      tpu.vector_store %arg7[%c0_11, %c0_12], %12 {strides = array<i32>} : memref<16x96xf32, #tpu.memory_space<vmem>>, vector<16x96xf32>,
    } else {
    }
    %c0 = arith.constant 0 : index
    %c0_1 = arith.constant 0 : index
    %3 = vector.load %arg7[%c0, %c0_1] : memref<16x96xf32, #tpu.memory_space<vmem>>, vector<16x96xf32>
    %c0_2 = arith.constant 0 : index
    %c0_3 = arith.constant 0 : index
    %4 = vector.load %arg3[%c0_2, %c0_3] : memref<16x32xbf16, #tpu.memory_space<vmem>>, vector<16x32xbf16>
    %c0_4 = arith.constant 0 : index
    %c0_5 = arith.constant 0 : index
    %5 = vector.load %arg4[%c0_4, %c0_5] : memref<32x96xbf16, #tpu.memory_space<vmem>>, vector<32x96xbf16>
    %cst = arith.constant dense<0.000000e+00> : vector<16x96xf32>
    %6 = tpu.matmul %4, %5, %cst {dimension_numbers = #tpu.dot_dimension_numbers<[1], [0], [0], [1], [0, 0, 1, 1], [], []>} : vector<16x32xbf16>, vector<32x96xbf16>, vector<16x96xf32> -> vector<16x96xf32>
    %7 = arith.addf %3, %6 : vector<16x96xf32>
    %c0_6 = arith.constant 0 : index
    %c0_7 = arith.constant 0 : index
    %8 = vector.load %arg7[%c0_6, %c0_7] : memref<16x96xf32, #tpu.memory_space<vmem>>, vector<16x96xf32>
    tpu.vector_store %arg7[%c0_6, %c0_7], %7 {strides = array<i32>} : memref<16x96xf32, #tpu.memory_space<vmem>>, vector<16x96xf32>,
    %c0_i32_8 = arith.constant 0 : i32
    %9 = arith.cmpi eq, %arg2, %c0_i32_8 : i32
    %10 = arith.extui %9 : i1 to i32
    %c0_i32_9 = arith.constant 0 : i32
    %11 = arith.cmpi ne, %10, %c0_i32_9 : i32
    scf.if %11 {
      %c0_10 = arith.constant 0 : index
      %c0_11 = arith.constant 0 : index
      %12 = vector.load %arg7[%c0_10, %c0_11] : memref<16x96xf32, #tpu.memory_space<vmem>>, vector<16x96xf32>
      %c0_12 = arith.constant 0 : index
      %c0_13 = arith.constant 0 : index
      %13 = vector.load %arg5[%c0_12, %c0_13] : memref<1x96xf32, #tpu.memory_space<vmem>>, vector<1x96xf32>
      %14 = vector.broadcast %13 : vector<1x96xf32> to vector<16x96xf32>
      %15 = arith.addf %12, %14 : vector<16x96xf32>
      %16 = arith.truncf %15 : vector<16x96xf32> to vector<16x96xbf16>
      %c0_14 = arith.constant 0 : index
      %c0_15 = arith.constant 0 : index
      %17 = vector.load %arg6[%c0_14, %c0_15] : memref<16x96xbf16, #tpu.memory_space<vmem>>, vector<16x96xbf16>
      tpu.vector_store %arg6[%c0_14, %c0_15], %16 {strides = array<i32>} : memref<16x96xbf16, #tpu.memory_space<vmem>>, vector<16x96xbf16>,
    } else {
    }
    return
  }
  func.func @transform_0(%arg0: i32, %arg1: i32, %arg2: i32) -> (i32, i32) {
    %c0_i32 = arith.constant 0 : i32
    return %arg0, %arg2 : i32, i32
  }
  func.func @transform_1(%arg0: i32, %arg1: i32, %arg2: i32) -> (i32, i32) {
    %c0_i32 = arith.constant 0 : i32
    return %arg2, %arg1 : i32, i32
  }
  func.func @transform_2(%arg0: i32, %arg1: i32, %arg2: i32) -> (i32, i32) {
    %c0_i32 = arith.constant 0 : i32
    %c0_i32_0 = arith.constant 0 : i32
    return %c0_i32, %arg1 : i32, i32
  }
  func.func @transform_3(%arg0: i32, %arg1: i32, %arg2: i32) -> (i32, i32) {
    %c0_i32 = arith.constant 0 : i32
    return %arg0, %arg1 : i32, i32
  }
}

module attributes {stable_mosaic.version = 11 : i64} {
  func.func @_mha_kernel(%arg0: i32, %arg1: i32, %arg2: memref<1x8x32xbf16, #tpu.memory_space<vmem>>, %arg3: memref<1x8x32xbf16, #tpu.memory_space<vmem>>, %arg4: memref<1x8x32xbf16, #tpu.memory_space<vmem>>, %arg5: memref<1x8x8xf32, #tpu.memory_space<vmem>>, %arg6: memref<1x8x32xbf16, #tpu.memory_space<vmem>>) attributes {dimension_semantics = [#tpu.dimension_semantics<parallel>, #tpu.dimension_semantics<parallel>], iteration_bounds = array<i64: 2, 1>, scalar_prefetch = 0 : i64, scratch_operands = 0 : i64, tpu.core_type = #tpu.core_type<tc>, window_params = [{transform_indices = @transform_0, window_bounds = array<i64: 1, 8, 32>}, {transform_indices = @transform_1, window_bounds = array<i64: 1, 8, 32>}, {transform_indices = @transform_2, window_bounds = array<i64: 1, 8, 32>}, {transform_indices = @transform_3, window_bounds = array<i64: 1, 8, 8>}, {transform_indices = @transform_4, window_bounds = array<i64: 1, 8, 32>}]} {
    %c0 = arith.constant 0 : index
    %c0_0 = arith.constant 0 : index
    %c0_1 = arith.constant 0 : index
    %0 = vector.load %arg2[%c0, %c0_0, %c0_1] : memref<1x8x32xbf16, #tpu.memory_space<vmem>>, vector<1x8x32xbf16>
    %1 = vector.shape_cast %0 : vector<1x8x32xbf16> to vector<8x32xbf16>
    %c0_2 = arith.constant 0 : index
    %c0_3 = arith.constant 0 : index
    %c0_4 = arith.constant 0 : index
    %2 = vector.load %arg3[%c0_2, %c0_3, %c0_4] : memref<1x8x32xbf16, #tpu.memory_space<vmem>>, vector<1x8x32xbf16>
    %3 = vector.shape_cast %2 : vector<1x8x32xbf16> to vector<8x32xbf16>
    %c0_5 = arith.constant 0 : index
    %c0_6 = arith.constant 0 : index
    %c0_7 = arith.constant 0 : index
    %4 = vector.load %arg4[%c0_5, %c0_6, %c0_7] : memref<1x8x32xbf16, #tpu.memory_space<vmem>>, vector<1x8x32xbf16>
    %5 = vector.shape_cast %4 : vector<1x8x32xbf16> to vector<8x32xbf16>
    %c0_8 = arith.constant 0 : index
    %c0_9 = arith.constant 0 : index
    %c0_10 = arith.constant 0 : index
    %6 = vector.load %arg5[%c0_8, %c0_9, %c0_10] : memref<1x8x8xf32, #tpu.memory_space<vmem>>, vector<1x8x8xf32>
    %7 = vector.shape_cast %6 : vector<1x8x8xf32> to vector<8x8xf32>
    %cst = arith.constant 0.000000e+00 : f32
    %8 = vector.broadcast %cst : f32 to vector<8x8xf32>
    %9 = arith.cmpf one, %7, %8 : vector<8x8xf32>
    %10 = vector.extract_strided_slice %1 {offsets = [0, 0], sizes = [8, 8], strides = [1, 1]} : vector<8x32xbf16> to vector<8x8xbf16>
    %11 = vector.extract_strided_slice %3 {offsets = [0, 0], sizes = [8, 8], strides = [1, 1]} : vector<8x32xbf16> to vector<8x8xbf16>
    %cst_11 = arith.constant dense<0.000000e+00> : vector<8x8xf32>
    %12 = tpu.matmul %10, %11, %cst_11 {dimension_numbers = #tpu.dot_dimension_numbers<[1], [1], [0], [0], [0, 0, 1, 0], [], []>} : vector<8x8xbf16>, vector<8x8xbf16>, vector<8x8xf32> -> vector<8x8xf32>
    %cst_12 = arith.constant 0.353553385 : f32
    %13 = vector.broadcast %cst_12 : f32 to vector<8x8xf32>
    %14 = arith.mulf %12, %13 : vector<8x8xf32>
    %cst_13 = arith.constant -1.000000e+09 : f32
    %15 = vector.broadcast %cst_13 : f32 to vector<8x8xf32>
    %16 = arith.select %9, %14, %15 : vector<8x8xi1>, vector<8x8xf32>
    %cst_14 = arith.constant dense<0xFF800000> : vector<8xf32>
    %17 = vector.multi_reduction <maximumf>, %16, %cst_14 [1] : vector<8x8xf32> to vector<8xf32>
    %18 = vector.shape_cast %17 : vector<8xf32> to vector<8x1xf32>
    %19 = vector.broadcast %18 : vector<8x1xf32> to vector<8x8xf32>
    %20 = arith.subf %16, %19 : vector<8x8xf32>
    %21 = math.exp %20 : vector<8x8xf32>
    %cst_15 = arith.constant dense<0.000000e+00> : vector<8xf32>
    %22 = vector.multi_reduction <add>, %21, %cst_15 [1] : vector<8x8xf32> to vector<8xf32>
    %23 = vector.shape_cast %22 : vector<8xf32> to vector<8x1xf32>
    %24 = tpu.reciprocal %23 {approx = true} : vector<8x1xf32> -> vector<8x1xf32>
    %25 = vector.broadcast %24 : vector<8x1xf32> to vector<8x8xf32>
    %26 = arith.mulf %21, %25 : vector<8x8xf32>
    %27 = arith.truncf %26 : vector<8x8xf32> to vector<8x8xbf16>
    %28 = vector.extract_strided_slice %5 {offsets = [0, 0], sizes = [8, 8], strides = [1, 1]} : vector<8x32xbf16> to vector<8x8xbf16>
    %cst_16 = arith.constant dense<0.000000e+00> : vector<8x8xf32>
    %29 = tpu.matmul %27, %28, %cst_16 {dimension_numbers = #tpu.dot_dimension_numbers<[1], [0], [0], [1], [0, 0, 1, 1], [], []>} : vector<8x8xbf16>, vector<8x8xbf16>, vector<8x8xf32> -> vector<8x8xf32>
    %30 = vector.extract_strided_slice %1 {offsets = [0, 8], sizes = [8, 8], strides = [1, 1]} : vector<8x32xbf16> to vector<8x8xbf16>
    %31 = vector.extract_strided_slice %3 {offsets = [0, 8], sizes = [8, 8], strides = [1, 1]} : vector<8x32xbf16> to vector<8x8xbf16>
    %cst_17 = arith.constant dense<0.000000e+00> : vector<8x8xf32>
    %32 = tpu.matmul %30, %31, %cst_17 {dimension_numbers = #tpu.dot_dimension_numbers<[1], [1], [0], [0], [0, 0, 1, 0], [], []>} : vector<8x8xbf16>, vector<8x8xbf16>, vector<8x8xf32> -> vector<8x8xf32>
    %cst_18 = arith.constant 0.353553385 : f32
    %33 = vector.broadcast %cst_18 : f32 to vector<8x8xf32>
    %34 = arith.mulf %32, %33 : vector<8x8xf32>
    %cst_19 = arith.constant -1.000000e+09 : f32
    %35 = vector.broadcast %cst_19 : f32 to vector<8x8xf32>
    %36 = arith.select %9, %34, %35 : vector<8x8xi1>, vector<8x8xf32>
    %cst_20 = arith.constant dense<0xFF800000> : vector<8xf32>
    %37 = vector.multi_reduction <maximumf>, %36, %cst_20 [1] : vector<8x8xf32> to vector<8xf32>
    %38 = vector.shape_cast %37 : vector<8xf32> to vector<8x1xf32>
    %39 = vector.broadcast %38 : vector<8x1xf32> to vector<8x8xf32>
    %40 = arith.subf %36, %39 : vector<8x8xf32>
    %41 = math.exp %40 : vector<8x8xf32>
    %cst_21 = arith.constant dense<0.000000e+00> : vector<8xf32>
    %42 = vector.multi_reduction <add>, %41, %cst_21 [1] : vector<8x8xf32> to vector<8xf32>
    %43 = vector.shape_cast %42 : vector<8xf32> to vector<8x1xf32>
    %44 = tpu.reciprocal %43 {approx = true} : vector<8x1xf32> -> vector<8x1xf32>
    %45 = vector.broadcast %44 : vector<8x1xf32> to vector<8x8xf32>
    %46 = arith.mulf %41, %45 : vector<8x8xf32>
    %47 = arith.truncf %46 : vector<8x8xf32> to vector<8x8xbf16>
    %48 = vector.extract_strided_slice %5 {offsets = [0, 8], sizes = [8, 8], strides = [1, 1]} : vector<8x32xbf16> to vector<8x8xbf16>
    %cst_22 = arith.constant dense<0.000000e+00> : vector<8x8xf32>
    %49 = tpu.matmul %47, %48, %cst_22 {dimension_numbers = #tpu.dot_dimension_numbers<[1], [0], [0], [1], [0, 0, 1, 1], [], []>} : vector<8x8xbf16>, vector<8x8xbf16>, vector<8x8xf32> -> vector<8x8xf32>
    %50 = vector.extract_strided_slice %1 {offsets = [0, 16], sizes = [8, 8], strides = [1, 1]} : vector<8x32xbf16> to vector<8x8xbf16>
    %51 = vector.extract_strided_slice %3 {offsets = [0, 16], sizes = [8, 8], strides = [1, 1]} : vector<8x32xbf16> to vector<8x8xbf16>
    %cst_23 = arith.constant dense<0.000000e+00> : vector<8x8xf32>
    %52 = tpu.matmul %50, %51, %cst_23 {dimension_numbers = #tpu.dot_dimension_numbers<[1], [1], [0], [0], [0, 0, 1, 0], [], []>} : vector<8x8xbf16>, vector<8x8xbf16>, vector<8x8xf32> -> vector<8x8xf32>
    %cst_24 = arith.constant 0.353553385 : f32
    %53 = vector.broadcast %cst_24 : f32 to vector<8x8xf32>
    %54 = arith.mulf %52, %53 : vector<8x8xf32>
    %cst_25 = arith.constant -1.000000e+09 : f32
    %55 = vector.broadcast %cst_25 : f32 to vector<8x8xf32>
    %56 = arith.select %9, %54, %55 : vector<8x8xi1>, vector<8x8xf32>
    %cst_26 = arith.constant dense<0xFF800000> : vector<8xf32>
    %57 = vector.multi_reduction <maximumf>, %56, %cst_26 [1] : vector<8x8xf32> to vector<8xf32>
    %58 = vector.shape_cast %57 : vector<8xf32> to vector<8x1xf32>
    %59 = vector.broadcast %58 : vector<8x1xf32> to vector<8x8xf32>
    %60 = arith.subf %56, %59 : vector<8x8xf32>
    %61 = math.exp %60 : vector<8x8xf32>
    %cst_27 = arith.constant dense<0.000000e+00> : vector<8xf32>
    %62 = vector.multi_reduction <add>, %61, %cst_27 [1] : vector<8x8xf32> to vector<8xf32>
    %63 = vector.shape_cast %62 : vector<8xf32> to vector<8x1xf32>
    %64 = tpu.reciprocal %63 {approx = true} : vector<8x1xf32> -> vector<8x1xf32>
    %65 = vector.broadcast %64 : vector<8x1xf32> to vector<8x8xf32>
    %66 = arith.mulf %61, %65 : vector<8x8xf32>
    %67 = arith.truncf %66 : vector<8x8xf32> to vector<8x8xbf16>
    %68 = vector.extract_strided_slice %5 {offsets = [0, 16], sizes = [8, 8], strides = [1, 1]} : vector<8x32xbf16> to vector<8x8xbf16>
    %cst_28 = arith.constant dense<0.000000e+00> : vector<8x8xf32>
    %69 = tpu.matmul %67, %68, %cst_28 {dimension_numbers = #tpu.dot_dimension_numbers<[1], [0], [0], [1], [0, 0, 1, 1], [], []>} : vector<8x8xbf16>, vector<8x8xbf16>, vector<8x8xf32> -> vector<8x8xf32>
    %70 = vector.extract_strided_slice %1 {offsets = [0, 24], sizes = [8, 8], strides = [1, 1]} : vector<8x32xbf16> to vector<8x8xbf16>
    %71 = vector.extract_strided_slice %3 {offsets = [0, 24], sizes = [8, 8], strides = [1, 1]} : vector<8x32xbf16> to vector<8x8xbf16>
    %cst_29 = arith.constant dense<0.000000e+00> : vector<8x8xf32>
    %72 = tpu.matmul %70, %71, %cst_29 {dimension_numbers = #tpu.dot_dimension_numbers<[1], [1], [0], [0], [0, 0, 1, 0], [], []>} : vector<8x8xbf16>, vector<8x8xbf16>, vector<8x8xf32> -> vector<8x8xf32>
    %cst_30 = arith.constant 0.353553385 : f32
    %73 = vector.broadcast %cst_30 : f32 to vector<8x8xf32>
    %74 = arith.mulf %72, %73 : vector<8x8xf32>
    %cst_31 = arith.constant -1.000000e+09 : f32
    %75 = vector.broadcast %cst_31 : f32 to vector<8x8xf32>
    %76 = arith.select %9, %74, %75 : vector<8x8xi1>, vector<8x8xf32>
    %cst_32 = arith.constant dense<0xFF800000> : vector<8xf32>
    %77 = vector.multi_reduction <maximumf>, %76, %cst_32 [1] : vector<8x8xf32> to vector<8xf32>
    %78 = vector.shape_cast %77 : vector<8xf32> to vector<8x1xf32>
    %79 = vector.broadcast %78 : vector<8x1xf32> to vector<8x8xf32>
    %80 = arith.subf %76, %79 : vector<8x8xf32>
    %81 = math.exp %80 : vector<8x8xf32>
    %cst_33 = arith.constant dense<0.000000e+00> : vector<8xf32>
    %82 = vector.multi_reduction <add>, %81, %cst_33 [1] : vector<8x8xf32> to vector<8xf32>
    %83 = vector.shape_cast %82 : vector<8xf32> to vector<8x1xf32>
    %84 = tpu.reciprocal %83 {approx = true} : vector<8x1xf32> -> vector<8x1xf32>
    %85 = vector.broadcast %84 : vector<8x1xf32> to vector<8x8xf32>
    %86 = arith.mulf %81, %85 : vector<8x8xf32>
    %87 = arith.truncf %86 : vector<8x8xf32> to vector<8x8xbf16>
    %88 = vector.extract_strided_slice %5 {offsets = [0, 24], sizes = [8, 8], strides = [1, 1]} : vector<8x32xbf16> to vector<8x8xbf16>
    %cst_34 = arith.constant dense<0.000000e+00> : vector<8x8xf32>
    %89 = tpu.matmul %87, %88, %cst_34 {dimension_numbers = #tpu.dot_dimension_numbers<[1], [0], [0], [1], [0, 0, 1, 1], [], []>} : vector<8x8xbf16>, vector<8x8xbf16>, vector<8x8xf32> -> vector<8x8xf32>
    %90 = tpu.concatenate %29, %49, %69, %89 in 1 : vector<8x8xf32>, vector<8x8xf32>, vector<8x8xf32>, vector<8x8xf32> -> vector<8x32xf32>
    %91 = arith.truncf %90 : vector<8x32xf32> to vector<8x32xbf16>
    %c0_35 = arith.constant 0 : index
    %c0_36 = arith.constant 0 : index
    %c0_37 = arith.constant 0 : index
    %92 = vector.load %arg6[%c0_35, %c0_36, %c0_37] : memref<1x8x32xbf16, #tpu.memory_space<vmem>>, vector<1x8x32xbf16>
    %93 = vector.shape_cast %92 : vector<1x8x32xbf16> to vector<8x32xbf16>
    %94 = vector.shape_cast %91 : vector<8x32xbf16> to vector<1x8x32xbf16>
    tpu.vector_store %arg6[%c0_35, %c0_36, %c0_37], %94 {strides = array<i32>} : memref<1x8x32xbf16, #tpu.memory_space<vmem>>, vector<1x8x32xbf16>,
    return
  }
  func.func @transform_0(%arg0: i32, %arg1: i32) -> (i32, i32, i32) {
    %c0_i32 = arith.constant 0 : i32
    %c0_i32_0 = arith.constant 0 : i32
    return %arg0, %arg1, %c0_i32 : i32, i32, i32
  }
  func.func @transform_1(%arg0: i32, %arg1: i32) -> (i32, i32, i32) {
    %c0_i32 = arith.constant 0 : i32
    %c0_i32_0 = arith.constant 0 : i32
    %c0_i32_1 = arith.constant 0 : i32
    return %arg0, %c0_i32, %c0_i32_0 : i32, i32, i32
  }
  func.func @transform_2(%arg0: i32, %arg1: i32) -> (i32, i32, i32) {
    %c0_i32 = arith.constant 0 : i32
    %c0_i32_0 = arith.constant 0 : i32
    %c0_i32_1 = arith.constant 0 : i32
    return %arg0, %c0_i32, %c0_i32_0 : i32, i32, i32
  }
  func.func @transform_3(%arg0: i32, %arg1: i32) -> (i32, i32, i32) {
    %c0_i32 = arith.constant 0 : i32
    %c0_i32_0 = arith.constant 0 : i32
    return %arg0, %arg1, %c0_i32 : i32, i32, i32
  }
  func.func @transform_4(%arg0: i32, %arg1: i32) -> (i32, i32, i32) {
    %c0_i32 = arith.constant 0 : i32
    %c0_i32_0 = arith.constant 0 : i32
    return %arg0, %arg1, %c0_i32 : i32, i32, i32
  }
}

module attributes {stable_mosaic.version = 11 : i64} {
  func.func @_linear_kernel(%arg0: i32, %arg1: i32, %arg2: i32, %arg3: memref<16x32xbf16, #tpu.memory_space<vmem>>, %arg4: memref<32x32xbf16, #tpu.memory_space<vmem>>, %arg5: memref<1x32xf32, #tpu.memory_space<vmem>>, %arg6: memref<16x32xf32, #tpu.memory_space<vmem>>, %arg7: memref<16x32xf32, #tpu.memory_space<vmem>>, %arg8: memref<16x32xf32, #tpu.memory_space<vmem>>) attributes {dimension_semantics = [#tpu.dimension_semantics<parallel>, #tpu.dimension_semantics<parallel>, #tpu.dimension_semantics<arbitrary>], iteration_bounds = array<i64: 1, 1, 1>, scalar_prefetch = 0 : i64, scratch_operands = 1 : i64, tpu.core_type = #tpu.core_type<tc>, window_params = [{transform_indices = @transform_0, window_bounds = array<i64: 16, 32>}, {transform_indices = @transform_1, window_bounds = array<i64: 32, 32>}, {transform_indices = @transform_2, window_bounds = array<i64: 1, 32>}, {transform_indices = @transform_3, window_bounds = array<i64: 16, 32>}, {transform_indices = @transform_4, window_bounds = array<i64: 16, 32>}]} {
    %c0_i32 = arith.constant 0 : i32
    %0 = arith.cmpi eq, %arg2, %c0_i32 : i32
    %1 = arith.extui %0 : i1 to i32
    %c0_i32_0 = arith.constant 0 : i32
    %2 = arith.cmpi ne, %1, %c0_i32_0 : i32
    scf.if %2 {
      %cst_10 = arith.constant 0.000000e+00 : f32
      %12 = vector.broadcast %cst_10 : f32 to vector<16x32xf32>
      %c0_11 = arith.constant 0 : index
      %c0_12 = arith.constant 0 : index
      %13 = vector.load %arg8[%c0_11, %c0_12] : memref<16x32xf32, #tpu.memory_space<vmem>>, vector<16x32xf32>
      tpu.vector_store %arg8[%c0_11, %c0_12], %12 {strides = array<i32>} : memref<16x32xf32, #tpu.memory_space<vmem>>, vector<16x32xf32>,
    } else {
    }
    %c0 = arith.constant 0 : index
    %c0_1 = arith.constant 0 : index
    %3 = vector.load %arg8[%c0, %c0_1] : memref<16x32xf32, #tpu.memory_space<vmem>>, vector<16x32xf32>
    %c0_2 = arith.constant 0 : index
    %c0_3 = arith.constant 0 : index
    %4 = vector.load %arg3[%c0_2, %c0_3] : memref<16x32xbf16, #tpu.memory_space<vmem>>, vector<16x32xbf16>
    %c0_4 = arith.constant 0 : index
    %c0_5 = arith.constant 0 : index
    %5 = vector.load %arg4[%c0_4, %c0_5] : memref<32x32xbf16, #tpu.memory_space<vmem>>, vector<32x32xbf16>
    %cst = arith.constant dense<0.000000e+00> : vector<16x32xf32>
    %6 = tpu.matmul %4, %5, %cst {dimension_numbers = #tpu.dot_dimension_numbers<[1], [0], [0], [1], [0, 0, 1, 1], [], []>} : vector<16x32xbf16>, vector<32x32xbf16>, vector<16x32xf32> -> vector<16x32xf32>
    %7 = arith.addf %3, %6 : vector<16x32xf32>
    %c0_6 = arith.constant 0 : index
    %c0_7 = arith.constant 0 : index
    %8 = vector.load %arg8[%c0_6, %c0_7] : memref<16x32xf32, #tpu.memory_space<vmem>>, vector<16x32xf32>
    tpu.vector_store %arg8[%c0_6, %c0_7], %7 {strides = array<i32>} : memref<16x32xf32, #tpu.memory_space<vmem>>, vector<16x32xf32>,
    %c0_i32_8 = arith.constant 0 : i32
    %9 = arith.cmpi eq, %arg2, %c0_i32_8 : i32
    %10 = arith.extui %9 : i1 to i32
    %c0_i32_9 = arith.constant 0 : i32
    %11 = arith.cmpi ne, %10, %c0_i32_9 : i32
    scf.if %11 {
      %c0_10 = arith.constant 0 : index
      %c0_11 = arith.constant 0 : index
      %12 = vector.load %arg8[%c0_10, %c0_11] : memref<16x32xf32, #tpu.memory_space<vmem>>, vector<16x32xf32>
      %c0_12 = arith.constant 0 : index
      %c0_13 = arith.constant 0 : index
      %13 = vector.load %arg5[%c0_12, %c0_13] : memref<1x32xf32, #tpu.memory_space<vmem>>, vector<1x32xf32>
      %14 = vector.broadcast %13 : vector<1x32xf32> to vector<16x32xf32>
      %15 = arith.addf %12, %14 : vector<16x32xf32>
      %c0_14 = arith.constant 0 : index
      %c0_15 = arith.constant 0 : index
      %16 = vector.load %arg6[%c0_14, %c0_15] : memref<16x32xf32, #tpu.memory_space<vmem>>, vector<16x32xf32>
      %17 = arith.addf %15, %16 : vector<16x32xf32>
      %c0_16 = arith.constant 0 : index
      %c0_17 = arith.constant 0 : index
      %18 = vector.load %arg7[%c0_16, %c0_17] : memref<16x32xf32, #tpu.memory_space<vmem>>, vector<16x32xf32>
      tpu.vector_store %arg7[%c0_16, %c0_17], %17 {strides = array<i32>} : memref<16x32xf32, #tpu.memory_space<vmem>>, vector<16x32xf32>,
    } else {
    }
    return
  }
  func.func @transform_0(%arg0: i32, %arg1: i32, %arg2: i32) -> (i32, i32) {
    %c0_i32 = arith.constant 0 : i32
    return %arg0, %arg2 : i32, i32
  }
  func.func @transform_1(%arg0: i32, %arg1: i32, %arg2: i32) -> (i32, i32) {
    %c0_i32 = arith.constant 0 : i32
    return %arg2, %arg1 : i32, i32
  }
  func.func @transform_2(%arg0: i32, %arg1: i32, %arg2: i32) -> (i32, i32) {
    %c0_i32 = arith.constant 0 : i32
    %c0_i32_0 = arith.constant 0 : i32
    return %c0_i32, %arg1 : i32, i32
  }
  func.func @transform_3(%arg0: i32, %arg1: i32, %arg2: i32) -> (i32, i32) {
    %c0_i32 = arith.constant 0 : i32
    return %arg0, %arg1 : i32, i32
  }
  func.func @transform_4(%arg0: i32, %arg1: i32, %arg2: i32) -> (i32, i32) {
    %c0_i32 = arith.constant 0 : i32
    return %arg0, %arg1 : i32, i32
  }
}

module attributes {stable_mosaic.version = 11 : i64} {
  func.func @_linear_kernel(%arg0: i32, %arg1: i32, %arg2: i32, %arg3: memref<16x32xbf16, #tpu.memory_space<vmem>>, %arg4: memref<32x64xbf16, #tpu.memory_space<vmem>>, %arg5: memref<1x64xf32, #tpu.memory_space<vmem>>, %arg6: memref<16x64xbf16, #tpu.memory_space<vmem>>, %arg7: memref<16x64xf32, #tpu.memory_space<vmem>>) attributes {dimension_semantics = [#tpu.dimension_semantics<parallel>, #tpu.dimension_semantics<parallel>, #tpu.dimension_semantics<arbitrary>], iteration_bounds = array<i64: 1, 1, 1>, scalar_prefetch = 0 : i64, scratch_operands = 1 : i64, tpu.core_type = #tpu.core_type<tc>, window_params = [{transform_indices = @transform_0, window_bounds = array<i64: 16, 32>}, {transform_indices = @transform_1, window_bounds = array<i64: 32, 64>}, {transform_indices = @transform_2, window_bounds = array<i64: 1, 64>}, {transform_indices = @transform_3, window_bounds = array<i64: 16, 64>}]} {
    %c0_i32 = arith.constant 0 : i32
    %0 = arith.cmpi eq, %arg2, %c0_i32 : i32
    %1 = arith.extui %0 : i1 to i32
    %c0_i32_0 = arith.constant 0 : i32
    %2 = arith.cmpi ne, %1, %c0_i32_0 : i32
    scf.if %2 {
      %cst_10 = arith.constant 0.000000e+00 : f32
      %12 = vector.broadcast %cst_10 : f32 to vector<16x64xf32>
      %c0_11 = arith.constant 0 : index
      %c0_12 = arith.constant 0 : index
      %13 = vector.load %arg7[%c0_11, %c0_12] : memref<16x64xf32, #tpu.memory_space<vmem>>, vector<16x64xf32>
      tpu.vector_store %arg7[%c0_11, %c0_12], %12 {strides = array<i32>} : memref<16x64xf32, #tpu.memory_space<vmem>>, vector<16x64xf32>,
    } else {
    }
    %c0 = arith.constant 0 : index
    %c0_1 = arith.constant 0 : index
    %3 = vector.load %arg7[%c0, %c0_1] : memref<16x64xf32, #tpu.memory_space<vmem>>, vector<16x64xf32>
    %c0_2 = arith.constant 0 : index
    %c0_3 = arith.constant 0 : index
    %4 = vector.load %arg3[%c0_2, %c0_3] : memref<16x32xbf16, #tpu.memory_space<vmem>>, vector<16x32xbf16>
    %c0_4 = arith.constant 0 : index
    %c0_5 = arith.constant 0 : index
    %5 = vector.load %arg4[%c0_4, %c0_5] : memref<32x64xbf16, #tpu.memory_space<vmem>>, vector<32x64xbf16>
    %cst = arith.constant dense<0.000000e+00> : vector<16x64xf32>
    %6 = tpu.matmul %4, %5, %cst {dimension_numbers = #tpu.dot_dimension_numbers<[1], [0], [0], [1], [0, 0, 1, 1], [], []>} : vector<16x32xbf16>, vector<32x64xbf16>, vector<16x64xf32> -> vector<16x64xf32>
    %7 = arith.addf %3, %6 : vector<16x64xf32>
    %c0_6 = arith.constant 0 : index
    %c0_7 = arith.constant 0 : index
    %8 = vector.load %arg7[%c0_6, %c0_7] : memref<16x64xf32, #tpu.memory_space<vmem>>, vector<16x64xf32>
    tpu.vector_store %arg7[%c0_6, %c0_7], %7 {strides = array<i32>} : memref<16x64xf32, #tpu.memory_space<vmem>>, vector<16x64xf32>,
    %c0_i32_8 = arith.constant 0 : i32
    %9 = arith.cmpi eq, %arg2, %c0_i32_8 : i32
    %10 = arith.extui %9 : i1 to i32
    %c0_i32_9 = arith.constant 0 : i32
    %11 = arith.cmpi ne, %10, %c0_i32_9 : i32
    scf.if %11 {
      %c0_10 = arith.constant 0 : index
      %c0_11 = arith.constant 0 : index
      %12 = vector.load %arg7[%c0_10, %c0_11] : memref<16x64xf32, #tpu.memory_space<vmem>>, vector<16x64xf32>
      %c0_12 = arith.constant 0 : index
      %c0_13 = arith.constant 0 : index
      %13 = vector.load %arg5[%c0_12, %c0_13] : memref<1x64xf32, #tpu.memory_space<vmem>>, vector<1x64xf32>
      %14 = vector.broadcast %13 : vector<1x64xf32> to vector<16x64xf32>
      %15 = arith.addf %12, %14 : vector<16x64xf32>
      %16 = arith.truncf %15 : vector<16x64xf32> to vector<16x64xbf16>
      %c0_14 = arith.constant 0 : index
      %c0_15 = arith.constant 0 : index
      %17 = vector.load %arg6[%c0_14, %c0_15] : memref<16x64xbf16, #tpu.memory_space<vmem>>, vector<16x64xbf16>
      tpu.vector_store %arg6[%c0_14, %c0_15], %16 {strides = array<i32>} : memref<16x64xbf16, #tpu.memory_space<vmem>>, vector<16x64xbf16>,
    } else {
    }
    return
  }
  func.func @transform_0(%arg0: i32, %arg1: i32, %arg2: i32) -> (i32, i32) {
    %c0_i32 = arith.constant 0 : i32
    return %arg0, %arg2 : i32, i32
  }
  func.func @transform_1(%arg0: i32, %arg1: i32, %arg2: i32) -> (i32, i32) {
    %c0_i32 = arith.constant 0 : i32
    return %arg2, %arg1 : i32, i32
  }
  func.func @transform_2(%arg0: i32, %arg1: i32, %arg2: i32) -> (i32, i32) {
    %c0_i32 = arith.constant 0 : i32
    %c0_i32_0 = arith.constant 0 : i32
    return %c0_i32, %arg1 : i32, i32
  }
  func.func @transform_3(%arg0: i32, %arg1: i32, %arg2: i32) -> (i32, i32) {
    %c0_i32 = arith.constant 0 : i32
    return %arg0, %arg1 : i32, i32
  }
}

module attributes {stable_mosaic.version = 11 : i64} {
  func.func @_layernorm_kernel(%arg0: i32, %arg1: memref<16x32xf32, #tpu.memory_space<vmem>>, %arg2: memref<1x32xf32, #tpu.memory_space<vmem>>, %arg3: memref<1x32xf32, #tpu.memory_space<vmem>>, %arg4: memref<16x32xf32, #tpu.memory_space<vmem>>) attributes {dimension_semantics = [#tpu.dimension_semantics<parallel>], iteration_bounds = array<i64: 1>, scalar_prefetch = 0 : i64, scratch_operands = 0 : i64, tpu.core_type = #tpu.core_type<tc>, window_params = [{transform_indices = @transform_0, window_bounds = array<i64: 16, 32>}, {pipeline_mode = #tpu.pipeline_mode<synchronous>, transform_indices = @transform_1, window_bounds = array<i64: 1, 32>}, {pipeline_mode = #tpu.pipeline_mode<synchronous>, transform_indices = @transform_2, window_bounds = array<i64: 1, 32>}, {transform_indices = @transform_3, window_bounds = array<i64: 16, 32>}]} {
    %c0 = arith.constant 0 : index
    %c0_0 = arith.constant 0 : index
    %0 = vector.load %arg1[%c0, %c0_0] : memref<16x32xf32, #tpu.memory_space<vmem>>, vector<16x32xf32>
    %cst = arith.constant dense<0.000000e+00> : vector<16xf32>
    %1 = vector.multi_reduction <add>, %0, %cst [1] : vector<16x32xf32> to vector<16xf32>
    %2 = vector.shape_cast %1 : vector<16xf32> to vector<16x1xf32>
    %cst_1 = arith.constant 3.200000e+01 : f32
    %3 = vector.broadcast %cst_1 : f32 to vector<16x1xf32>
    %4 = arith.divf %2, %3 : vector<16x1xf32>
    %5 = vector.broadcast %4 : vector<16x1xf32> to vector<16x32xf32>
    %6 = arith.subf %0, %5 : vector<16x32xf32>
    %7 = arith.mulf %6, %6 : vector<16x32xf32>
    %cst_2 = arith.constant dense<0.000000e+00> : vector<16xf32>
    %8 = vector.multi_reduction <add>, %7, %cst_2 [1] : vector<16x32xf32> to vector<16xf32>
    %9 = vector.shape_cast %8 : vector<16xf32> to vector<16x1xf32>
    %cst_3 = arith.constant 3.200000e+01 : f32
    %10 = vector.broadcast %cst_3 : f32 to vector<16x1xf32>
    %11 = arith.divf %9, %10 : vector<16x1xf32>
    %cst_4 = arith.constant 9.99999997E-7 : f32
    %12 = vector.broadcast %cst_4 : f32 to vector<16x1xf32>
    %13 = arith.addf %11, %12 : vector<16x1xf32>
    %14 = math.rsqrt %13 : vector<16x1xf32>
    %15 = vector.broadcast %4 : vector<16x1xf32> to vector<16x32xf32>
    %16 = arith.subf %0, %15 : vector<16x32xf32>
    %17 = vector.broadcast %14 : vector<16x1xf32> to vector<16x32xf32>
    %18 = arith.mulf %16, %17 : vector<16x32xf32>
    %c0_5 = arith.constant 0 : index
    %c0_6 = arith.constant 0 : index
    %19 = vector.load %arg2[%c0_5, %c0_6] : memref<1x32xf32, #tpu.memory_space<vmem>>, vector<1x32xf32>
    %20 = vector.broadcast %19 : vector<1x32xf32> to vector<16x32xf32>
    %21 = arith.mulf %18, %20 : vector<16x32xf32>
    %c0_7 = arith.constant 0 : index
    %c0_8 = arith.constant 0 : index
    %22 = vector.load %arg3[%c0_7, %c0_8] : memref<1x32xf32, #tpu.memory_space<vmem>>, vector<1x32xf32>
    %23 = vector.broadcast %22 : vector<1x32xf32> to vector<16x32xf32>
    %24 = arith.addf %21, %23 : vector<16x32xf32>
    %c0_9 = arith.constant 0 : index
    %c0_10 = arith.constant 0 : index
    %25 = vector.load %arg4[%c0_9, %c0_10] : memref<16x32xf32, #tpu.memory_space<vmem>>, vector<16x32xf32>
    tpu.vector_store %arg4[%c0_9, %c0_10], %24 {strides = array<i32>} : memref<16x32xf32, #tpu.memory_space<vmem>>, vector<16x32xf32>,
    return
  }
  func.func @transform_0(%arg0: i32) -> (i32, i32) {
    %c0_i32 = arith.constant 0 : i32
    %c0_i32_0 = arith.constant 0 : i32
    return %arg0, %c0_i32 : i32, i32
  }
  func.func @transform_1(%arg0: i32) -> (i32, i32) {
    %c0_i32 = arith.constant 0 : i32
    %c0_i32_0 = arith.constant 0 : i32
    %c0_i32_1 = arith.constant 0 : i32
    return %c0_i32, %c0_i32_0 : i32, i32
  }
  func.func @transform_2(%arg0: i32) -> (i32, i32) {
    %c0_i32 = arith.constant 0 : i32
    %c0_i32_0 = arith.constant 0 : i32
    %c0_i32_1 = arith.constant 0 : i32
    return %c0_i32, %c0_i32_0 : i32, i32
  }
  func.func @transform_3(%arg0: i32) -> (i32, i32) {
    %c0_i32 = arith.constant 0 : i32
    %c0_i32_0 = arith.constant 0 : i32
    return %arg0, %c0_i32 : i32, i32
  }
}

module attributes {stable_mosaic.version = 11 : i64} {
  func.func @_linear_kernel(%arg0: i32, %arg1: i32, %arg2: i32, %arg3: memref<16x32xbf16, #tpu.memory_space<vmem>>, %arg4: memref<32x64xbf16, #tpu.memory_space<vmem>>, %arg5: memref<1x64xf32, #tpu.memory_space<vmem>>, %arg6: memref<16x64xbf16, #tpu.memory_space<vmem>>, %arg7: memref<16x64xf32, #tpu.memory_space<vmem>>) attributes {dimension_semantics = [#tpu.dimension_semantics<parallel>, #tpu.dimension_semantics<parallel>, #tpu.dimension_semantics<arbitrary>], iteration_bounds = array<i64: 1, 1, 1>, scalar_prefetch = 0 : i64, scratch_operands = 1 : i64, tpu.core_type = #tpu.core_type<tc>, window_params = [{transform_indices = @transform_0, window_bounds = array<i64: 16, 32>}, {transform_indices = @transform_1, window_bounds = array<i64: 32, 64>}, {transform_indices = @transform_2, window_bounds = array<i64: 1, 64>}, {transform_indices = @transform_3, window_bounds = array<i64: 16, 64>}]} {
    %c0_i32 = arith.constant 0 : i32
    %0 = arith.cmpi eq, %arg2, %c0_i32 : i32
    %1 = arith.extui %0 : i1 to i32
    %c0_i32_0 = arith.constant 0 : i32
    %2 = arith.cmpi ne, %1, %c0_i32_0 : i32
    scf.if %2 {
      %cst_10 = arith.constant 0.000000e+00 : f32
      %12 = vector.broadcast %cst_10 : f32 to vector<16x64xf32>
      %c0_11 = arith.constant 0 : index
      %c0_12 = arith.constant 0 : index
      %13 = vector.load %arg7[%c0_11, %c0_12] : memref<16x64xf32, #tpu.memory_space<vmem>>, vector<16x64xf32>
      tpu.vector_store %arg7[%c0_11, %c0_12], %12 {strides = array<i32>} : memref<16x64xf32, #tpu.memory_space<vmem>>, vector<16x64xf32>,
    } else {
    }
    %c0 = arith.constant 0 : index
    %c0_1 = arith.constant 0 : index
    %3 = vector.load %arg7[%c0, %c0_1] : memref<16x64xf32, #tpu.memory_space<vmem>>, vector<16x64xf32>
    %c0_2 = arith.constant 0 : index
    %c0_3 = arith.constant 0 : index
    %4 = vector.load %arg3[%c0_2, %c0_3] : memref<16x32xbf16, #tpu.memory_space<vmem>>, vector<16x32xbf16>
    %c0_4 = arith.constant 0 : index
    %c0_5 = arith.constant 0 : index
    %5 = vector.load %arg4[%c0_4, %c0_5] : memref<32x64xbf16, #tpu.memory_space<vmem>>, vector<32x64xbf16>
    %cst = arith.constant dense<0.000000e+00> : vector<16x64xf32>
    %6 = tpu.matmul %4, %5, %cst {dimension_numbers = #tpu.dot_dimension_numbers<[1], [0], [0], [1], [0, 0, 1, 1], [], []>} : vector<16x32xbf16>, vector<32x64xbf16>, vector<16x64xf32> -> vector<16x64xf32>
    %7 = arith.addf %3, %6 : vector<16x64xf32>
    %c0_6 = arith.constant 0 : index
    %c0_7 = arith.constant 0 : index
    %8 = vector.load %arg7[%c0_6, %c0_7] : memref<16x64xf32, #tpu.memory_space<vmem>>, vector<16x64xf32>
    tpu.vector_store %arg7[%c0_6, %c0_7], %7 {strides = array<i32>} : memref<16x64xf32, #tpu.memory_space<vmem>>, vector<16x64xf32>,
    %c0_i32_8 = arith.constant 0 : i32
    %9 = arith.cmpi eq, %arg2, %c0_i32_8 : i32
    %10 = arith.extui %9 : i1 to i32
    %c0_i32_9 = arith.constant 0 : i32
    %11 = arith.cmpi ne, %10, %c0_i32_9 : i32
    scf.if %11 {
      %c0_10 = arith.constant 0 : index
      %c0_11 = arith.constant 0 : index
      %12 = vector.load %arg7[%c0_10, %c0_11] : memref<16x64xf32, #tpu.memory_space<vmem>>, vector<16x64xf32>
      %c0_12 = arith.constant 0 : index
      %c0_13 = arith.constant 0 : index
      %13 = vector.load %arg5[%c0_12, %c0_13] : memref<1x64xf32, #tpu.memory_space<vmem>>, vector<1x64xf32>
      %14 = vector.broadcast %13 : vector<1x64xf32> to vector<16x64xf32>
      %15 = arith.addf %12, %14 : vector<16x64xf32>
      %cst_14 = arith.constant 0.000000e+00 : f32
      %16 = vector.broadcast %cst_14 : f32 to vector<16x64xf32>
      %17 = arith.maximumf %15, %16 : vector<16x64xf32>
      %18 = arith.truncf %17 : vector<16x64xf32> to vector<16x64xbf16>
      %c0_15 = arith.constant 0 : index
      %c0_16 = arith.constant 0 : index
      %19 = vector.load %arg6[%c0_15, %c0_16] : memref<16x64xbf16, #tpu.memory_space<vmem>>, vector<16x64xbf16>
      tpu.vector_store %arg6[%c0_15, %c0_16], %18 {strides = array<i32>} : memref<16x64xbf16, #tpu.memory_space<vmem>>, vector<16x64xbf16>,
    } else {
    }
    return
  }
  func.func @transform_0(%arg0: i32, %arg1: i32, %arg2: i32) -> (i32, i32) {
    %c0_i32 = arith.constant 0 : i32
    return %arg0, %arg2 : i32, i32
  }
  func.func @transform_1(%arg0: i32, %arg1: i32, %arg2: i32) -> (i32, i32) {
    %c0_i32 = arith.constant 0 : i32
    return %arg2, %arg1 : i32, i32
  }
  func.func @transform_2(%arg0: i32, %arg1: i32, %arg2: i32) -> (i32, i32) {
    %c0_i32 = arith.constant 0 : i32
    %c0_i32_0 = arith.constant 0 : i32
    return %c0_i32, %arg1 : i32, i32
  }
  func.func @transform_3(%arg0: i32, %arg1: i32, %arg2: i32) -> (i32, i32) {
    %c0_i32 = arith.constant 0 : i32
    return %arg0, %arg1 : i32, i32
  }
}

module attributes {stable_mosaic.version = 11 : i64} {
  func.func @_linear_kernel(%arg0: i32, %arg1: i32, %arg2: i32, %arg3: memref<16x64xbf16, #tpu.memory_space<vmem>>, %arg4: memref<64x32xbf16, #tpu.memory_space<vmem>>, %arg5: memref<1x32xf32, #tpu.memory_space<vmem>>, %arg6: memref<16x32xf32, #tpu.memory_space<vmem>>, %arg7: memref<16x32xf32, #tpu.memory_space<vmem>>, %arg8: memref<16x32xf32, #tpu.memory_space<vmem>>) attributes {dimension_semantics = [#tpu.dimension_semantics<parallel>, #tpu.dimension_semantics<parallel>, #tpu.dimension_semantics<arbitrary>], iteration_bounds = array<i64: 1, 1, 1>, scalar_prefetch = 0 : i64, scratch_operands = 1 : i64, tpu.core_type = #tpu.core_type<tc>, window_params = [{transform_indices = @transform_0, window_bounds = array<i64: 16, 64>}, {transform_indices = @transform_1, window_bounds = array<i64: 64, 32>}, {transform_indices = @transform_2, window_bounds = array<i64: 1, 32>}, {transform_indices = @transform_3, window_bounds = array<i64: 16, 32>}, {transform_indices = @transform_4, window_bounds = array<i64: 16, 32>}]} {
    %c0_i32 = arith.constant 0 : i32
    %0 = arith.cmpi eq, %arg2, %c0_i32 : i32
    %1 = arith.extui %0 : i1 to i32
    %c0_i32_0 = arith.constant 0 : i32
    %2 = arith.cmpi ne, %1, %c0_i32_0 : i32
    scf.if %2 {
      %cst_10 = arith.constant 0.000000e+00 : f32
      %12 = vector.broadcast %cst_10 : f32 to vector<16x32xf32>
      %c0_11 = arith.constant 0 : index
      %c0_12 = arith.constant 0 : index
      %13 = vector.load %arg8[%c0_11, %c0_12] : memref<16x32xf32, #tpu.memory_space<vmem>>, vector<16x32xf32>
      tpu.vector_store %arg8[%c0_11, %c0_12], %12 {strides = array<i32>} : memref<16x32xf32, #tpu.memory_space<vmem>>, vector<16x32xf32>,
    } else {
    }
    %c0 = arith.constant 0 : index
    %c0_1 = arith.constant 0 : index
    %3 = vector.load %arg8[%c0, %c0_1] : memref<16x32xf32, #tpu.memory_space<vmem>>, vector<16x32xf32>
    %c0_2 = arith.constant 0 : index
    %c0_3 = arith.constant 0 : index
    %4 = vector.load %arg3[%c0_2, %c0_3] : memref<16x64xbf16, #tpu.memory_space<vmem>>, vector<16x64xbf16>
    %c0_4 = arith.constant 0 : index
    %c0_5 = arith.constant 0 : index
    %5 = vector.load %arg4[%c0_4, %c0_5] : memref<64x32xbf16, #tpu.memory_space<vmem>>, vector<64x32xbf16>
    %cst = arith.constant dense<0.000000e+00> : vector<16x32xf32>
    %6 = tpu.matmul %4, %5, %cst {dimension_numbers = #tpu.dot_dimension_numbers<[1], [0], [0], [1], [0, 0, 1, 1], [], []>} : vector<16x64xbf16>, vector<64x32xbf16>, vector<16x32xf32> -> vector<16x32xf32>
    %7 = arith.addf %3, %6 : vector<16x32xf32>
    %c0_6 = arith.constant 0 : index
    %c0_7 = arith.constant 0 : index
    %8 = vector.load %arg8[%c0_6, %c0_7] : memref<16x32xf32, #tpu.memory_space<vmem>>, vector<16x32xf32>
    tpu.vector_store %arg8[%c0_6, %c0_7], %7 {strides = array<i32>} : memref<16x32xf32, #tpu.memory_space<vmem>>, vector<16x32xf32>,
    %c0_i32_8 = arith.constant 0 : i32
    %9 = arith.cmpi eq, %arg2, %c0_i32_8 : i32
    %10 = arith.extui %9 : i1 to i32
    %c0_i32_9 = arith.constant 0 : i32
    %11 = arith.cmpi ne, %10, %c0_i32_9 : i32
    scf.if %11 {
      %c0_10 = arith.constant 0 : index
      %c0_11 = arith.constant 0 : index
      %12 = vector.load %arg8[%c0_10, %c0_11] : memref<16x32xf32, #tpu.memory_space<vmem>>, vector<16x32xf32>
      %c0_12 = arith.constant 0 : index
      %c0_13 = arith.constant 0 : index
      %13 = vector.load %arg5[%c0_12, %c0_13] : memref<1x32xf32, #tpu.memory_space<vmem>>, vector<1x32xf32>
      %14 = vector.broadcast %13 : vector<1x32xf32> to vector<16x32xf32>
      %15 = arith.addf %12, %14 : vector<16x32xf32>
      %c0_14 = arith.constant 0 : index
      %c0_15 = arith.constant 0 : index
      %16 = vector.load %arg6[%c0_14, %c0_15] : memref<16x32xf32, #tpu.memory_space<vmem>>, vector<16x32xf32>
      %17 = arith.addf %15, %16 : vector<16x32xf32>
      %c0_16 = arith.constant 0 : index
      %c0_17 = arith.constant 0 : index
      %18 = vector.load %arg7[%c0_16, %c0_17] : memref<16x32xf32, #tpu.memory_space<vmem>>, vector<16x32xf32>
      tpu.vector_store %arg7[%c0_16, %c0_17], %17 {strides = array<i32>} : memref<16x32xf32, #tpu.memory_space<vmem>>, vector<16x32xf32>,
    } else {
    }
    return
  }
  func.func @transform_0(%arg0: i32, %arg1: i32, %arg2: i32) -> (i32, i32) {
    %c0_i32 = arith.constant 0 : i32
    return %arg0, %arg2 : i32, i32
  }
  func.func @transform_1(%arg0: i32, %arg1: i32, %arg2: i32) -> (i32, i32) {
    %c0_i32 = arith.constant 0 : i32
    return %arg2, %arg1 : i32, i32
  }
  func.func @transform_2(%arg0: i32, %arg1: i32, %arg2: i32) -> (i32, i32) {
    %c0_i32 = arith.constant 0 : i32
    %c0_i32_0 = arith.constant 0 : i32
    return %c0_i32, %arg1 : i32, i32
  }
  func.func @transform_3(%arg0: i32, %arg1: i32, %arg2: i32) -> (i32, i32) {
    %c0_i32 = arith.constant 0 : i32
    return %arg0, %arg1 : i32, i32
  }
  func.func @transform_4(%arg0: i32, %arg1: i32, %arg2: i32) -> (i32, i32) {
    %c0_i32 = arith.constant 0 : i32
    return %arg0, %arg1 : i32, i32
  }
}

module attributes {stable_mosaic.version = 11 : i64} {
  func.func @_linear_kernel(%arg0: i32, %arg1: i32, %arg2: i32, %arg3: memref<16x32xbf16, #tpu.memory_space<vmem>>, %arg4: memref<32x32xbf16, #tpu.memory_space<vmem>>, %arg5: memref<1x32xf32, #tpu.memory_space<vmem>>, %arg6: memref<16x32xbf16, #tpu.memory_space<vmem>>, %arg7: memref<16x32xf32, #tpu.memory_space<vmem>>) attributes {dimension_semantics = [#tpu.dimension_semantics<parallel>, #tpu.dimension_semantics<parallel>, #tpu.dimension_semantics<arbitrary>], iteration_bounds = array<i64: 1, 1, 1>, scalar_prefetch = 0 : i64, scratch_operands = 1 : i64, tpu.core_type = #tpu.core_type<tc>, window_params = [{transform_indices = @transform_0, window_bounds = array<i64: 16, 32>}, {transform_indices = @transform_1, window_bounds = array<i64: 32, 32>}, {transform_indices = @transform_2, window_bounds = array<i64: 1, 32>}, {transform_indices = @transform_3, window_bounds = array<i64: 16, 32>}]} {
    %c0_i32 = arith.constant 0 : i32
    %0 = arith.cmpi eq, %arg2, %c0_i32 : i32
    %1 = arith.extui %0 : i1 to i32
    %c0_i32_0 = arith.constant 0 : i32
    %2 = arith.cmpi ne, %1, %c0_i32_0 : i32
    scf.if %2 {
      %cst_10 = arith.constant 0.000000e+00 : f32
      %12 = vector.broadcast %cst_10 : f32 to vector<16x32xf32>
      %c0_11 = arith.constant 0 : index
      %c0_12 = arith.constant 0 : index
      %13 = vector.load %arg7[%c0_11, %c0_12] : memref<16x32xf32, #tpu.memory_space<vmem>>, vector<16x32xf32>
      tpu.vector_store %arg7[%c0_11, %c0_12], %12 {strides = array<i32>} : memref<16x32xf32, #tpu.memory_space<vmem>>, vector<16x32xf32>,
    } else {
    }
    %c0 = arith.constant 0 : index
    %c0_1 = arith.constant 0 : index
    %3 = vector.load %arg7[%c0, %c0_1] : memref<16x32xf32, #tpu.memory_space<vmem>>, vector<16x32xf32>
    %c0_2 = arith.constant 0 : index
    %c0_3 = arith.constant 0 : index
    %4 = vector.load %arg3[%c0_2, %c0_3] : memref<16x32xbf16, #tpu.memory_space<vmem>>, vector<16x32xbf16>
    %c0_4 = arith.constant 0 : index
    %c0_5 = arith.constant 0 : index
    %5 = vector.load %arg4[%c0_4, %c0_5] : memref<32x32xbf16, #tpu.memory_space<vmem>>, vector<32x32xbf16>
    %cst = arith.constant dense<0.000000e+00> : vector<16x32xf32>
    %6 = tpu.matmul %4, %5, %cst {dimension_numbers = #tpu.dot_dimension_numbers<[1], [0], [0], [1], [0, 0, 1, 1], [], []>} : vector<16x32xbf16>, vector<32x32xbf16>, vector<16x32xf32> -> vector<16x32xf32>
    %7 = arith.addf %3, %6 : vector<16x32xf32>
    %c0_6 = arith.constant 0 : index
    %c0_7 = arith.constant 0 : index
    %8 = vector.load %arg7[%c0_6, %c0_7] : memref<16x32xf32, #tpu.memory_space<vmem>>, vector<16x32xf32>
    tpu.vector_store %arg7[%c0_6, %c0_7], %7 {strides = array<i32>} : memref<16x32xf32, #tpu.memory_space<vmem>>, vector<16x32xf32>,
    %c0_i32_8 = arith.constant 0 : i32
    %9 = arith.cmpi eq, %arg2, %c0_i32_8 : i32
    %10 = arith.extui %9 : i1 to i32
    %c0_i32_9 = arith.constant 0 : i32
    %11 = arith.cmpi ne, %10, %c0_i32_9 : i32
    scf.if %11 {
      %c0_10 = arith.constant 0 : index
      %c0_11 = arith.constant 0 : index
      %12 = vector.load %arg7[%c0_10, %c0_11] : memref<16x32xf32, #tpu.memory_space<vmem>>, vector<16x32xf32>
      %c0_12 = arith.constant 0 : index
      %c0_13 = arith.constant 0 : index
      %13 = vector.load %arg5[%c0_12, %c0_13] : memref<1x32xf32, #tpu.memory_space<vmem>>, vector<1x32xf32>
      %14 = vector.broadcast %13 : vector<1x32xf32> to vector<16x32xf32>
      %15 = arith.addf %12, %14 : vector<16x32xf32>
      %16 = arith.truncf %15 : vector<16x32xf32> to vector<16x32xbf16>
      %c0_14 = arith.constant 0 : index
      %c0_15 = arith.constant 0 : index
      %17 = vector.load %arg6[%c0_14, %c0_15] : memref<16x32xbf16, #tpu.memory_space<vmem>>, vector<16x32xbf16>
      tpu.vector_store %arg6[%c0_14, %c0_15], %16 {strides = array<i32>} : memref<16x32xbf16, #tpu.memory_space<vmem>>, vector<16x32xbf16>,
    } else {
    }
    return
  }
  func.func @transform_0(%arg0: i32, %arg1: i32, %arg2: i32) -> (i32, i32) {
    %c0_i32 = arith.constant 0 : i32
    return %arg0, %arg2 : i32, i32
  }
  func.func @transform_1(%arg0: i32, %arg1: i32, %arg2: i32) -> (i32, i32) {
    %c0_i32 = arith.constant 0 : i32
    return %arg2, %arg1 : i32, i32
  }
  func.func @transform_2(%arg0: i32, %arg1: i32, %arg2: i32) -> (i32, i32) {
    %c0_i32 = arith.constant 0 : i32
    %c0_i32_0 = arith.constant 0 : i32
    return %c0_i32, %arg1 : i32, i32
  }
  func.func @transform_3(%arg0: i32, %arg1: i32, %arg2: i32) -> (i32, i32) {
    %c0_i32 = arith.constant 0 : i32
    return %arg0, %arg1 : i32, i32
  }
}

module attributes {stable_mosaic.version = 11 : i64} {
  func.func @_linear_kernel(%arg0: i32, %arg1: i32, %arg2: i32, %arg3: memref<16x32xbf16, #tpu.memory_space<vmem>>, %arg4: memref<32x64xbf16, #tpu.memory_space<vmem>>, %arg5: memref<1x64xf32, #tpu.memory_space<vmem>>, %arg6: memref<16x64xf32, #tpu.memory_space<vmem>>, %arg7: memref<16x64xf32, #tpu.memory_space<vmem>>) attributes {dimension_semantics = [#tpu.dimension_semantics<parallel>, #tpu.dimension_semantics<parallel>, #tpu.dimension_semantics<arbitrary>], iteration_bounds = array<i64: 1, 1, 1>, scalar_prefetch = 0 : i64, scratch_operands = 1 : i64, tpu.core_type = #tpu.core_type<tc>, window_params = [{transform_indices = @transform_0, window_bounds = array<i64: 16, 32>}, {transform_indices = @transform_1, window_bounds = array<i64: 32, 64>}, {transform_indices = @transform_2, window_bounds = array<i64: 1, 64>}, {transform_indices = @transform_3, window_bounds = array<i64: 16, 64>}]} {
    %c0_i32 = arith.constant 0 : i32
    %0 = arith.cmpi eq, %arg2, %c0_i32 : i32
    %1 = arith.extui %0 : i1 to i32
    %c0_i32_0 = arith.constant 0 : i32
    %2 = arith.cmpi ne, %1, %c0_i32_0 : i32
    scf.if %2 {
      %cst_10 = arith.constant 0.000000e+00 : f32
      %12 = vector.broadcast %cst_10 : f32 to vector<16x64xf32>
      %c0_11 = arith.constant 0 : index
      %c0_12 = arith.constant 0 : index
      %13 = vector.load %arg7[%c0_11, %c0_12] : memref<16x64xf32, #tpu.memory_space<vmem>>, vector<16x64xf32>
      tpu.vector_store %arg7[%c0_11, %c0_12], %12 {strides = array<i32>} : memref<16x64xf32, #tpu.memory_space<vmem>>, vector<16x64xf32>,
    } else {
    }
    %c0 = arith.constant 0 : index
    %c0_1 = arith.constant 0 : index
    %3 = vector.load %arg7[%c0, %c0_1] : memref<16x64xf32, #tpu.memory_space<vmem>>, vector<16x64xf32>
    %c0_2 = arith.constant 0 : index
    %c0_3 = arith.constant 0 : index
    %4 = vector.load %arg3[%c0_2, %c0_3] : memref<16x32xbf16, #tpu.memory_space<vmem>>, vector<16x32xbf16>
    %c0_4 = arith.constant 0 : index
    %c0_5 = arith.constant 0 : index
    %5 = vector.load %arg4[%c0_4, %c0_5] : memref<32x64xbf16, #tpu.memory_space<vmem>>, vector<32x64xbf16>
    %cst = arith.constant dense<0.000000e+00> : vector<16x64xf32>
    %6 = tpu.matmul %4, %5, %cst {dimension_numbers = #tpu.dot_dimension_numbers<[1], [0], [0], [1], [0, 0, 1, 1], [], []>} : vector<16x32xbf16>, vector<32x64xbf16>, vector<16x64xf32> -> vector<16x64xf32>
    %7 = arith.addf %3, %6 : vector<16x64xf32>
    %c0_6 = arith.constant 0 : index
    %c0_7 = arith.constant 0 : index
    %8 = vector.load %arg7[%c0_6, %c0_7] : memref<16x64xf32, #tpu.memory_space<vmem>>, vector<16x64xf32>
    tpu.vector_store %arg7[%c0_6, %c0_7], %7 {strides = array<i32>} : memref<16x64xf32, #tpu.memory_space<vmem>>, vector<16x64xf32>,
    %c0_i32_8 = arith.constant 0 : i32
    %9 = arith.cmpi eq, %arg2, %c0_i32_8 : i32
    %10 = arith.extui %9 : i1 to i32
    %c0_i32_9 = arith.constant 0 : i32
    %11 = arith.cmpi ne, %10, %c0_i32_9 : i32
    scf.if %11 {
      %c0_10 = arith.constant 0 : index
      %c0_11 = arith.constant 0 : index
      %12 = vector.load %arg7[%c0_10, %c0_11] : memref<16x64xf32, #tpu.memory_space<vmem>>, vector<16x64xf32>
      %c0_12 = arith.constant 0 : index
      %c0_13 = arith.constant 0 : index
      %13 = vector.load %arg5[%c0_12, %c0_13] : memref<1x64xf32, #tpu.memory_space<vmem>>, vector<1x64xf32>
      %14 = vector.broadcast %13 : vector<1x64xf32> to vector<16x64xf32>
      %15 = arith.addf %12, %14 : vector<16x64xf32>
      %c0_14 = arith.constant 0 : index
      %c0_15 = arith.constant 0 : index
      %16 = vector.load %arg6[%c0_14, %c0_15] : memref<16x64xf32, #tpu.memory_space<vmem>>, vector<16x64xf32>
      tpu.vector_store %arg6[%c0_14, %c0_15], %15 {strides = array<i32>} : memref<16x64xf32, #tpu.memory_space<vmem>>, vector<16x64xf32>,
    } else {
    }
    return
  }
  func.func @transform_0(%arg0: i32, %arg1: i32, %arg2: i32) -> (i32, i32) {
    %c0_i32 = arith.constant 0 : i32
    return %arg0, %arg2 : i32, i32
  }
  func.func @transform_1(%arg0: i32, %arg1: i32, %arg2: i32) -> (i32, i32) {
    %c0_i32 = arith.constant 0 : i32
    return %arg2, %arg1 : i32, i32
  }
  func.func @transform_2(%arg0: i32, %arg1: i32, %arg2: i32) -> (i32, i32) {
    %c0_i32 = arith.constant 0 : i32
    %c0_i32_0 = arith.constant 0 : i32
    return %c0_i32, %arg1 : i32, i32
  }
  func.func @transform_3(%arg0: i32, %arg1: i32, %arg2: i32) -> (i32, i32) {
    %c0_i32 = arith.constant 0 : i32
    return %arg0, %arg1 : i32, i32
  }
}

</mosaic_0001>

<bundles_post_ra>
// kernel: transformer_forward.42
= control target key start
LH: loop header
LB: loop body
LE: loop exit
PB: predicated region body
PF: predicated region fallthrough
CT: control target
= control target key end

     0   :  { %vm19_vm0 = vcmask 785408   ;;  %v151_v0 = vmov 0.0   ;;  %vm152_vm1 = vmmov 0   ;;  %vm47_vm2 = vcmask 261120   ;;  %s195_s1 = inlined_call_operand.vmem [shape: bf16[32,96], index: 1, kind: input, shape index: {}]   ;;  %s196_s0 = inlined_call_operand.vmem [shape: bf16[16,32], index: 0, kind: input, shape index: {}]   ;;  %s197_s2 = inlined_call_operand.vmem [shape: f32[1,96], index: 2, kind: input, shape index: {}]   ;;  %s198_s3 = inlined_call_operand.vmem [shape: bf16[16,96], index: 3, kind: output, shape index: {}]  }
   0x1   :  { %138 = vmatprep.subr.bf16.mxu0 %v151_v0  ;;  %v148_v1 = vld [vmem:[%s195_s1] sm:$0xff]   ;;  %142 = vmatprep.mubr.msk.bf16.mxu0 %vm152_vm1, %v151_v0  ;;  %20 = vst.msk [vmem:[#allocation2] sm:$0xff] %vm19_vm0, %v151_v0  ;;  %21 = vst.msk [vmem:[#allocation2 + $0x8] sm:$0xff] %vm19_vm0, %v151_v0  ;;  %v149_v2 = vld [vmem:[%s195_s1 + $0x8] sm:$0xff]   ;;  %vm119_vm3 = vcmask 781312  }
   0x2   :  { %139 = vmatpush3.bf16.msra.mxu0 %v148_v1  ;;  %v150_v3 = vld [vmem:[%s196_s0] sm:$0xff]  }
   0x3   :  { %140 = vmatprep.subr.bf16.mxu0 %v151_v0  ;;  %v130_v12 = vld [vmem:[%s197_s2] ss:$0 sm:$0xff] }
   0x6   :  { %141 = vmatpush3.bf16.msra.mxu0 %v149_v2 }
   0x8   :  { %v22_v4 = vld [vmem:[#allocation2] sm:$0xff]  ;;  %v23_v6 = vld [vmem:[#allocation2 + $0x8] sm:$0xff] }
   0x9   :  { %143 = vmatmul.mubr.msk.bf16.vlgmr.msra.gmra.mrb[0].mxu0 %vm47_vm2, %v150_v3 }
  0xdc   :  { %v85_v5 = vpop.f32.mrb[0].mxu0 }
  0xdd   :  { %v92_v7 = vadd.f32 %v85_v5, %v22_v4  ;;  %v144_v8 = vpop.f32.mrb[1].mxu0 }
  0xde   :  { %v88_v9 = vpop.f32.mrb[2].mxu0 }
  0xdf   :  { %95 = vst.msk [vmem:[#allocation2] sm:$0xff] %vm19_vm0, %v92_v7  ;;  %v93_v10 = vadd.f32 %v88_v9, %v23_v6  ;;  %v145_v11 = vpop.f32.mrb[3].mxu0 }
  0xe1   :  { %96 = vst.msk [vmem:[#allocation2 + $0x8] sm:$0xff] %vm19_vm0, %v93_v10 }
  0xe6   :  { %v100_v13 = vld [vmem:[#allocation2] sm:$0xff] }
  0xe7   :  { %v109_v14 = vadd.f32 %v130_v12, %v100_v13 }
  0xe8   :  { %v101_v15 = vld [vmem:[#allocation2 + $0x8] sm:$0xff] }
  0xe9   :  { %v133_v16 = vpack.c.bf16 %v109_v14, %v109_v14  ;;  %v110_v17 = vadd.f32 %v130_v12, %v101_v15 }
  0xeb   :  { %120 = vst.msk [vmem:[%s198_s3] sm:$0xf] %vm119_vm3, %v133_v16  ;;  %v134_v18 = vpack.c.bf16 %v110_v17, %v110_v17 }
  0xed   :  { %121 = vst.msk [vmem:[%s198_s3 + $0x4] sm:$0xf] %vm119_vm3, %v134_v18 }

// kernel: transformer_forward.41
= control target key start
LH: loop header
LB: loop body
LE: loop exit
PB: predicated region body
PF: predicated region fallthrough
CT: control target
= control target key end

     0   :  { %vm16_vm0 = vcmask 261120   ;;  %vm70_vm1 = vcmask 257024   ;;  %s129_s0 = inlined_call_operand.vmem [shape: f32[16,32], index: 0, kind: input, shape index: {}]   ;;  %s130_s1 = inlined_call_operand.vmem [shape: f32[1,32], index: 1, kind: input, shape index: {}]   ;;  %s131_s2 = inlined_call_operand.vmem [shape: f32[1,32], index: 2, kind: input, shape index: {}]   ;;  %s132_s3 = inlined_call_operand.vmem [shape: bf16[16,32], index: 3, kind: output, shape index: {}]  }
   0x1   :  { %v14_v0 = vld [vmem:[%s129_s0] sm:$0xff]  ;;  %v15_v1 = vld [vmem:[%s129_s0 + $0x8] sm:$0xff] }
   0x2   :  { %v17_v2 = vsel %vm16_vm0, %v14_v0, 0.0  ;;  %v20_v3 = vsel %vm16_vm0, %v15_v1, 0.0  ;;  %v77_v21 = vld [vmem:[%s130_s1] ss:$0 sm:$0xff] }
   0x3   :  { %18 = vadd.xlane.f32.xlu0 %v17_v2  ;;  %v78_v23 = vld [vmem:[%s131_s2] ss:$0 sm:$0xff] }
   0x7   :  { %21 = vadd.xlane.f32.xlu0 %v20_v3 }
  0x90   :  { %v19_v4 = vpop.xlane.xlu0 %18 }
  0x91   :  { %v24_v5 = vmul.f32 0.03125, %v19_v4 }
  0x93   :  { %v26_v6 = vsub.f32 %v14_v0, %v24_v5 }
  0x94   :  { %v22_v7 = vpop.xlane.xlu0 %21 }
  0x95   :  { %v25_v8 = vmul.f32 0.03125, %v22_v7  ;;  %v28_v9 = vmul.f32 %v26_v6, %v26_v6 }
  0x97   :  { %v27_v10 = vsub.f32 %v15_v1, %v25_v8  ;;  %v30_v11 = vsel %vm16_vm0, %v28_v9, 0.0 }
  0x98   :  { %31 = vadd.xlane.f32.xlu1 %v30_v11 }
  0x99   :  { %v29_v12 = vmul.f32 %v27_v10, %v27_v10 }
  0x9b   :  { %v33_v13 = vsel %vm16_vm0, %v29_v12, 0.0 }
  0x9c   :  { %34 = vadd.xlane.f32.xlu1 %v33_v13 }
 0x125   :  { %v32_v14 = vpop.xlane.xlu1 %31 }
 0x126   :  { %v36_v15 = vmul.f32 0.03125, %v32_v14 }
 0x128   :  { %v38_v16 = vadd.f32 1e-06, %v36_v15 }
 0x129   :  { %v35_v17 = vpop.xlane.xlu1 %34 }
 0x12a   :  { %83 = vrsqrt.f32 %v38_v16  ;;  %v37_v18 = vmul.f32 0.03125, %v35_v17 }
 0x12c   :  { %v39_v19 = vadd.f32 1e-06, %v37_v18 }
 0x12e   :  { %85 = vrsqrt.f32 %v39_v19 }
 0x134   :  { %v84_v20 = vpop.eup %83 }
 0x135   :  { %v42_v22 = vmul.f32 %v84_v20, %v26_v6 }
 0x137   :  { %v51_v24 = vmul.f32 %v77_v21, %v42_v22 }
 0x138   :  { %v86_v25 = vpop.eup %85 }
 0x139   :  { %v60_v26 = vadd.f32 %v78_v23, %v51_v24  ;;  %v43_v27 = vmul.f32 %v86_v25, %v27_v10 }
 0x13b   :  { %v81_v28 = vpack.c.bf16 %v60_v26, %v60_v26  ;;  %v52_v29 = vmul.f32 %v77_v21, %v43_v27 }
 0x13d   :  { %71 = vst.msk [vmem:[%s132_s3] sm:$0xf] %vm70_vm1, %v81_v28  ;;  %v61_v30 = vadd.f32 %v78_v23, %v52_v29 }
 0x13f   :  { %v82_v31 = vpack.c.bf16 %v61_v30, %v61_v30 }
 0x141   :  { %72 = vst.msk [vmem:[%s132_s3 + $0x4] sm:$0xf] %vm70_vm1, %v82_v31 }

// kernel: transformer_forward.44
= control target key start
LH: loop header
LB: loop body
LE: loop exit
PB: predicated region body
PF: predicated region fallthrough
CT: control target
= control target key end

     0   :  { %vm22_vm0 = vcmask 261120   ;;  %v144_v0 = vmov 0.0   ;;  %vm145_vm1 = vmmov 0   ;;  %s202_s1 = inlined_call_operand.vmem [shape: bf16[32,32], index: 1, kind: input, shape index: {}]   ;;  %s203_s0 = inlined_call_operand.vmem [shape: bf16[16,32], index: 0, kind: input, shape index: {}]   ;;  %s204_s2 = inlined_call_operand.vmem [shape: f32[1,32], index: 2, kind: input, shape index: {}]   ;;  %s205_s3 = inlined_call_operand.vmem [shape: f32[16,32], index: 3, kind: input, shape index: {}]   ;;  %s206_s4 = inlined_call_operand.vmem [shape: f32[16,32], index: 4, kind: output, shape index: {}]  }
   0x1   :  { %131 = vmatprep.subr.bf16.mxu0 %v144_v0  ;;  %v141_v1 = vld [vmem:[%s202_s1] sm:$0xff]   ;;  %135 = vmatprep.mubr.msk.bf16.mxu0 %vm145_vm1, %v144_v0  ;;  %23 = vst.msk [vmem:[#allocation2] sm:$0xff] %vm22_vm0, %v144_v0  ;;  %24 = vst.msk [vmem:[#allocation2 + $0x8] sm:$0xff] %vm22_vm0, %v144_v0  ;;  %v142_v2 = vld [vmem:[%s202_s1 + $0x8] sm:$0xff]  }
   0x2   :  { %132 = vmatpush3.bf16.msra.mxu0 %v141_v1  ;;  %v143_v3 = vld [vmem:[%s203_s0] sm:$0xff]   ;;  %v114_v17 = vld [vmem:[%s205_s3 + $0x8] sm:$0xff] }
   0x3   :  { %133 = vmatprep.subr.bf16.mxu0 %v144_v0  ;;  %v127_v12 = vld [vmem:[%s204_s2] ss:$0 sm:$0xff] }
   0x4   :  { %v113_v14 = vld [vmem:[%s205_s3] sm:$0xff] }
   0x6   :  { %134 = vmatpush3.bf16.msra.mxu0 %v142_v2 }
   0x8   :  { %v25_v4 = vld [vmem:[#allocation2] sm:$0xff]  ;;  %v26_v6 = vld [vmem:[#allocation2 + $0x8] sm:$0xff] }
   0x9   :  { %136 = vmatmul.mubr.msk.bf16.vlgmr.msra.gmra.mrb[0].mxu0 %vm22_vm0, %v143_v3 }
  0xdc   :  { %v88_v5 = vpop.f32.mrb[0].mxu0 }
  0xdd   :  { %v95_v7 = vadd.f32 %v88_v5, %v25_v4  ;;  %v137_v8 = vpop.f32.mrb[1].mxu0 }
  0xde   :  { %v91_v9 = vpop.f32.mrb[2].mxu0 }
  0xdf   :  { %97 = vst.msk [vmem:[#allocation2] sm:$0xff] %vm22_vm0, %v95_v7  ;;  %v96_v10 = vadd.f32 %v91_v9, %v26_v6  ;;  %v138_v11 = vpop.f32.mrb[3].mxu0 }
  0xe1   :  { %98 = vst.msk [vmem:[#allocation2 + $0x8] sm:$0xff] %vm22_vm0, %v96_v10 }
  0xe6   :  { %v102_v13 = vld [vmem:[#allocation2] sm:$0xff] }
  0xe7   :  { %v111_v15 = vadd.f32 %v127_v12, %v102_v13 }
  0xe8   :  { %v103_v16 = vld [vmem:[#allocation2 + $0x8] sm:$0xff] }
  0xe9   :  { %v115_v18 = vadd.f32 %v113_v14, %v111_v15  ;;  %v112_v19 = vadd.f32 %v127_v12, %v103_v16 }
  0xeb   :  { %117 = vst.msk [vmem:[%s206_s4] sm:$0xff] %vm22_vm0, %v115_v18  ;;  %v116_v20 = vadd.f32 %v114_v17, %v112_v19 }
  0xed   :  { %118 = vst.msk [vmem:[%s206_s4 + $0x8] sm:$0xff] %vm22_vm0, %v116_v20 }

// kernel: transformer_forward.43
= control target key start
LH: loop header
LB: loop body
LE: loop exit
PB: predicated region body
PF: predicated region fallthrough
CT: control target
= control target key end

     0   :  { %s1073_s15 = smov 0   ;;  %s1075_s16 = smov 0   ;;  %s1198_s0 = inlined_call_operand.vmem [shape: bf16[2,8,32], index: 0, kind: input, shape index: {}]   ;;  %s1199_s1 = inlined_call_operand.vmem [shape: bf16[2,8,32], index: 1, kind: input, shape index: {}]   ;;  %s1200_s2 = inlined_call_operand.vmem [shape: bf16[2,8,32], index: 2, kind: input, shape index: {}]   ;;  %s1201_s3 = inlined_call_operand.vmem [shape: f32[2,8,8], index: 3, kind: input, shape index: {}]   ;;  %s1202_s4 = inlined_call_operand.vmem [shape: bf16[2,8,32], index: 4, kind: output, shape index: {}]  }
   0x1   :  { %s1077_s17 = smov 0  }
   0x2 LB: > { %s26_s18 = sadd.s32 1, %s1034_s16  ;;  %p882_p0 = scmp.ge.s32.totalorder %s1038_s17, 1  ;;  %s1038_s17 = sphi %s1077_s17, %s14_s17   ;;  %s1034_s16 = sphi %s1075_s16, %s1204_s16   ;;  %s1030_s15 = sphi %s1073_s15, %s1203_s15  }
   0x3   : > { %p28_p1 = scmp.ge.s32.totalorder %s26_s18, 2  ;;  %p212_p2 = scmp.lt.s32.totalorder %s1038_s17, 3 }
   0x5   : > { %s1206_s18 = smov (%p28_p1, %s26_s18), 0  ;;  %p213_p3 = pnand %p882_p0, %p212_p2 }
   0x6   : > { %p257_p4 = scmp.lt.s32.totalorder (!%p213_p3), %s1030_s15, 1  ;;  %v1040_v0 = vmov (!%p213_p3), 0.0   ;;  %vm1041_vm0 = vmmov (!%p213_p3), 0   ;;  %vm292_vm1 = vcmask (!%p213_p3), 64512   ;;  %s1042_s30 = smov (!%p213_p3), 120   ;;  %vm356_vm3 = vcmask (!%p213_p3), 1043456  }
   0x7   : > { %216 = sbr.rel (%p213_p3) target bundleno = 1480 (0x5c8), region = 36  ;;  %917 = vmatprep.subr.bf16.mxu0 (!%p213_p3), %v1040_v0  ;;  %919 = vmatprep.mubr.msk.bf16.mxu0 (!%p213_p3), %vm1041_vm0, %v1040_v0  ;;  %s1043_s5 = smov (!%p213_p3), 112   ;;  %vm758_vm4 = vcmask (!%p213_p3), 130048   ;;  %vm760_vm5 = vcmask (!%p213_p3), 195584   ;;  %vm763_vm6 = vcmask (!%p213_p3), 257024  }
   0x8   : > { %923 = vmatprep.subr.bf16.mxu1 (!%p213_p3), %v1040_v0  ;;  %925 = vmatprep.mubr.msk.bf16.mxu1 (!%p213_p3), %vm1041_vm0, %v1040_v0  ;;  %s1044_s6 = smov (!%p213_p3), 104   ;;  %s1045_s10 = smov (!%p213_p3), 8  }
   0x9   : > { %s1046_s11 = smov (!%p213_p3), 16   ;;  %s1047_s12 = smov (!%p213_p3), 24  }
   0xe   : > { %s1208_s15 = smov (!%p257_p4, %s1030_s15), 1 }
   0xf   : > { %s1097_s19 = sshll.u32 %s1208_s15, 2  ;;  %s886_s26 = sshll.u32 %s1208_s15, 3 }
  0x10   : > { %s267_s22 = scalar_lea.vmem %s1199_s1, %s1097_s19  ;;  %s263_s25 = scalar_lea.vmem %s1198_s0, %s1097_s19 }
  0x11   : > { %v288_v1 = vld [vmem:[%s267_s22] sm:$0xf]  ;;  %s278_s29 = scalar_lea.vmem %s1201_s3, %s886_s26  ;;  %s271_s9 = scalar_lea.vmem %s1200_s2, %s1097_s19 }
  0x12   : > { %v297_v2 = vsel %vm292_vm1, %v288_v1, 0  ;;  %v287_v3 = vld [vmem:[%s263_s25] sm:$0xf]  ;;  %v891_v12 = vcombine.low %v288_v1, %v288_v1  ;;  %s285_s15 = scalar_lea.vmem %s1202_s4, %s1097_s19 }
  0x13   : > { %918 = vmatpush3.bf16.xpose.msra.mxu0 %v297_v2  ;;  %v1115_v4 = vld [vmem:[%s278_s29] sm:$0xff]  ;;  %v890_v13 = vcombine.low %v287_v3, %v287_v3 }
  0x14   : > { %935 = vmatprep.subr.bf16.mxu0 %v1040_v0  ;;  %vm291_vm2 = vcmp.ne.f32.partialorder %v1115_v4, 0.0  ;;  %408 = vrot.lane.b32.xlu1 %v891_v12, %s1042_s30  ;;  %v1131_v19 = vld [vmem:[%s271_s9] sm:$0xf] }
  0x15   : > { %v358_v20 = vsel %vm356_vm3, %v1131_v19, 0 }
  0x16   : > { %924 = vmatpush3.bf16.msra.mxu1 %v358_v20 }
  0x17   : > { %929 = vmatprep.subr.bf16.mxu1 %v1040_v0 }
  0x18   : > { %403 = vrot.lane.b32.xlu1 %v890_v13, %s1042_s30 }
  0x1a   : > { %920 = vmatmul.mubr.msk.bf16.vlgmr.msra.gmra.mrb[0].mxu0 %vm292_vm1, %v287_v3 }
  0x1b   : > { %937 = vmatprep.mubr.msk.bf16.mxu0 %vm1041_vm0, %v1040_v0 }
  0x1c   : > { %521 = vrot.lane.b32.xlu1 %v890_v13, %s1043_s5 }
  0x20   : > { %635 = vrot.lane.b32.xlu1 %v891_v12, %s1044_s6 }
  0x24   : > { %633 = vrot.lane.b32.xlu1 %v890_v13, %s1044_s6 }
  0x86   : > { %v409_v23 = vpop.permute.xlu1 %408 }
  0x87   : > { %v414_v25 = vsel %vm292_vm1, %v409_v23, 0 }
  0x8a   : > { %v404_v27 = vpop.permute.xlu1 %403 }
  0x8e   : > { %v522_v29 = vpop.permute.xlu1 %521 }
  0x92   : > { %v636_v31 = vpop.permute.xlu1 %635 }
  0x93   : > { %v641_v32 = vsel %vm292_vm1, %v636_v31, 0 }
  0x96   : > { %v634_v33 = vpop.permute.xlu1 %633 }
  0xed   : > { %v333_v5 = vpop.f32.mrb[0].mxu0 }
  0xee   : > { %v339_v6 = vmul.f32 0.35355338, %v333_v5  ;;  %v921_v7 = vpop.f32.mrb[1].mxu0 }
  0xef   : > { %v336_v8 = vpop.f32.mrb[2].mxu0 }
  0xf0   : > { %v922_v9 = vpop.f32.mrb[3].mxu0  ;;  %v340_v10 = vsel %vm291_vm2, %v339_v6, -1e+09  ;;  %v893_v6 = vcombine.low %v1131_v19, %v1131_v19 }
  0xf1   : > { %v341_v11 = vsel %vm292_vm1, %v340_v10, -inf }
  0xf2   : > { %342 = vmax.xlane.f32.xlu0 %v341_v11 }
 0x17f   : > { %v343_v14 = vpop.xlane.xlu0 %342 }
 0x180   : > { %v344_v15 = vsub.f32 %v340_v10, %v343_v14 }
 0x182   : > { %v345_v16 = vmul.f32 1.442695, %v344_v15 }
 0x184   : > { %1000 = vpow2.f32 %v345_v16 }
 0x18e   : > { %v1001_v17 = vpop.eup %1000 }
 0x18f   : > { %v347_v18 = vsel %vm292_vm1, %v1001_v17, 0.0 }
 0x190   : > { %348 = vadd.xlane.f32.xlu0 %v347_v18 }
 0x1a6   : > { %523 = vrot.lane.b32.xlu0 %v891_v12, %s1043_s5 }
 0x21d   : > { %v349_v21 = vpop.xlane.xlu0 %348 }
 0x21e   : > { %1002 = vrcp.f32 %v349_v21 }
 0x221   : > { %v524_v28 = vpop.permute.xlu0 %523 }
 0x222   : > { %v529_v30 = vsel %vm292_vm1, %v524_v28, 0 }
 0x228   : > { %v1003_v22 = vpop.eup %1002 }
 0x229   : > { %v351_v24 = vmul.f32 %v1003_v22, %v1001_v17 }
 0x22b   : > { %v352_v26 = vpack.c.bf16 %v351_v24, %v351_v24 }
 0x22d   : > { %926 = vmatmul.mubr.msk.bf16.vlgmr.msra.gmra.mrb[0].mxu1 %vm292_vm1, %v352_v26 }
 0x22e   : > { %930 = vmatpush3.bf16.xpose.msra.mxu1 %v414_v25  ;;  %931 = vmatprep.mubr.msk.bf16.mxu1 %vm1041_vm0, %v1040_v0 }
 0x22f   : > { %941 = vmatprep.subr.bf16.mxu1 %v1040_v0 }
 0x235   : > { %932 = vmatmul.mubr.msk.bf16.vlgmr.msra.gmra.mrb[4].mxu1 %vm292_vm1, %v404_v27 }
 0x236   : > { %942 = vmatpush3.bf16.xpose.msra.mxu1 %v529_v30  ;;  %943 = vmatprep.mubr.msk.bf16.mxu1 %vm1041_vm0, %v1040_v0 }
 0x237   : > { %953 = vmatprep.subr.bf16.mxu1 %v1040_v0 }
 0x23d   : > { %944 = vmatmul.mubr.msk.bf16.vlgmr.msra.gmra.mrb[8].mxu1 %vm292_vm1, %v522_v29 }
 0x23e   : > { %954 = vmatpush3.bf16.xpose.msra.mxu1 %v641_v32  ;;  %955 = vmatprep.mubr.msk.bf16.mxu1 %vm1041_vm0, %v1040_v0 }
 0x245   : > { %956 = vmatmul.mubr.msk.bf16.vlgmr.msra.gmra.mrb[12].mxu1 %vm292_vm1, %v634_v33 }
 0x300   : > { %v1152_v34 = vpop.f32.mrb[0].mxu1 }
 0x301   : > { %v927_v35 = vpop.f32.mrb[1].mxu1 }
 0x302   : > { %v397_v36 = vpop.f32.mrb[2].mxu1 }
 0x303   : > { %v928_v37 = vpop.f32.mrb[3].mxu1 }
 0x308   : > { %v450_v38 = vpop.f32.mrb[4].mxu1 }
 0x309   : > { %v456_v39 = vmul.f32 0.35355338, %v450_v38  ;;  %v933_v40 = vpop.f32.mrb[5].mxu1 }
 0x30a   : > { %v453_v41 = vpop.f32.mrb[6].mxu1 }
 0x30b   : > { %v934_v42 = vpop.f32.mrb[7].mxu1  ;;  %v457_v43 = vsel %vm291_vm2, %v456_v39, -1e+09 }
 0x30c   : > { %v458_v44 = vsel %vm292_vm1, %v457_v43, -inf }
 0x30d   : > { %459 = vmax.xlane.f32.xlu1 %v458_v44 }
 0x310   : > { %v565_v45 = vpop.f32.mrb[8].mxu1 }
 0x311   : > { %v571_v46 = vmul.f32 0.35355338, %v565_v45  ;;  %v945_v47 = vpop.f32.mrb[9].mxu1 }
 0x312   : > { %v568_v48 = vpop.f32.mrb[10].mxu1 }
 0x313   : > { %v572_v49 = vsel %vm291_vm2, %v571_v46, -1e+09  ;;  %v946_v50 = vpop.f32.mrb[11].mxu1 }
 0x314   : > { %v573_v51 = vsel %vm292_vm1, %v572_v49, -inf }
 0x315   : > { %574 = vmax.xlane.f32.xlu0 %v573_v51 }
 0x318   : > { %v677_v52 = vpop.f32.mrb[12].mxu1 }
 0x319   : > { %v683_v53 = vmul.f32 0.35355338, %v677_v52  ;;  %v957_v54 = vpop.f32.mrb[13].mxu1 }
 0x31a   : > { %v680_v55 = vpop.f32.mrb[14].mxu1 }
 0x31b   : > { %v684_v56 = vsel %vm291_vm2, %v683_v53, -1e+09  ;;  %v958_v57 = vpop.f32.mrb[15].mxu1 }
 0x31c   : > { %v685_v58 = vsel %vm292_vm1, %v684_v56, -inf }
 0x31d   : > { %686 = vmax.xlane.f32.xlu1 %v685_v58 }
 0x39a   : > { %v460_v59 = vpop.xlane.xlu1 %459 }
 0x39b   : > { %v461_v60 = vsub.f32 %v457_v43, %v460_v59 }
 0x39d   : > { %v462_v61 = vmul.f32 1.442695, %v461_v60 }
 0x39f   : > { %1004 = vpow2.f32 %v462_v61 }
 0x3a2   : > { %v575_v62 = vpop.xlane.xlu0 %574 }
 0x3a3   : > { %v576_v63 = vsub.f32 %v572_v49, %v575_v62 }
 0x3a5   : > { %v577_v1 = vmul.f32 1.442695, %v576_v63 }
 0x3a7   : > { %1006 = vpow2.f32 %v577_v1 }
 0x3a9   : > { %v1005_v2 = vpop.eup %1004 }
 0x3aa   : > { %v464_v3 = vsel %vm292_vm1, %v1005_v2, 0.0  ;;  %v687_v7 = vpop.xlane.xlu1 %686 }
 0x3ab   : > { %465 = vadd.xlane.f32.xlu1 %v464_v3  ;;  %v688_v8 = vsub.f32 %v684_v56, %v687_v7 }
 0x3ad   : > { %v689_v9 = vmul.f32 1.442695, %v688_v8 }
 0x3af   : > { %1008 = vpow2.f32 %v689_v9 }
 0x3b1   : > { %v1007_v5 = vpop.eup %1006 }
 0x3b2   : > { %v579_v4 = vsel %vm292_vm1, %v1007_v5, 0.0 }
 0x3b3   : > { %580 = vadd.xlane.f32.xlu0 %v579_v4 }
 0x3b9   : > { %v1009_v10 = vpop.eup %1008 }
 0x3ba   : > { %v691_v11 = vsel %vm292_vm1, %v1009_v10, 0.0 }
 0x3bc   : > { %585 = vrot.lane.b32.xlu1 %v893_v6, %s1043_s5 }
 0x3c9   : > { %473 = vrot.lane.b32.xlu0 %v893_v6, %s1042_s30 }
 0x3e0   : > { %692 = vadd.xlane.f32.xlu1 %v691_v11 }
 0x3f1   : > { %697 = vrot.lane.b32.xlu1 %v893_v6, %s1044_s6 }
 0x438   : > { %v466_v12 = vpop.xlane.xlu1 %465 }
 0x439   : > { %1010 = vrcp.f32 %v466_v12 }
 0x43c   : > { %v586_v18 = vpop.permute.xlu1 %585 }
 0x43d   : > { %v591_v20 = vsel %vm356_vm3, %v586_v18, 0 }
 0x440   : > { %v581_v13 = vpop.xlane.xlu0 %580 }
 0x441   : > { %1012 = vrcp.f32 %v581_v13 }
 0x443   : > { %v1011_v14 = vpop.eup %1010 }
 0x444   : > { %v468_v15 = vmul.f32 %v1011_v14, %v1005_v2  ;;  %v474_v16 = vpop.permute.xlu0 %473 }
 0x445   : > { %v479_v17 = vsel %vm356_vm3, %v474_v16, 0 }
 0x446   : > { %936 = vmatpush3.bf16.msra.mxu0 %v479_v17  ;;  %v469_v19 = vpack.c.bf16 %v468_v15, %v468_v15 }
 0x447   : > { %947 = vmatprep.subr.bf16.mxu0 %v1040_v0 }
 0x449   : > { %938 = vmatmul.mubr.msk.bf16.vlgmr.msra.gmra.mrb[4].mxu0 %vm292_vm1, %v469_v19 }
 0x44a   : > { %948 = vmatpush3.bf16.msra.mxu0 %v591_v20  ;;  %949 = vmatprep.mubr.msk.bf16.mxu0 %vm1041_vm0, %v1040_v0 }
 0x44b   : > { %v1013_v21 = vpop.eup %1012  ;;  %959 = vmatprep.subr.bf16.mxu0 %v1040_v0 }
 0x44c   : > { %v583_v22 = vmul.f32 %v1013_v21, %v1007_v5 }
 0x44e   : > { %v584_v23 = vpack.c.bf16 %v583_v22, %v583_v22 }
 0x451   : > { %950 = vmatmul.mubr.msk.bf16.vlgmr.msra.gmra.mrb[8].mxu0 %vm292_vm1, %v584_v23 }
 0x452   : > { %961 = vmatprep.mubr.msk.bf16.mxu0 %vm1041_vm0, %v1040_v0 }
 0x46d   : > { %v693_v24 = vpop.xlane.xlu1 %692 }
 0x46e   : > { %1014 = vrcp.f32 %v693_v24 }
 0x471   : > { %v698_v25 = vpop.permute.xlu1 %697 }
 0x472   : > { %v703_v26 = vsel %vm356_vm3, %v698_v25, 0 }
 0x473   : > { %960 = vmatpush3.bf16.msra.mxu0 %v703_v26 }
 0x478   : > { %v1015_v27 = vpop.eup %1014 }
 0x479   : > { %v695_v28 = vmul.f32 %v1015_v27, %v1009_v10 }
 0x47b   : > { %v696_v29 = vpack.c.bf16 %v695_v28, %v695_v28 }
 0x47d   : > { %962 = vmatmul.mubr.msk.bf16.vlgmr.msra.gmra.mrb[12].mxu0 %vm292_vm1, %v696_v29 }
 0x51c   : > { %v515_v30 = vpop.f32.mrb[4].mxu0 }
 0x51d   : > { %746 = vrot.lane.b32.xlu0 %v515_v30, %s1045_s10  ;;  %v939_v31 = vpop.f32.mrb[5].mxu0 }
 0x51e   : > { %v518_v32 = vpop.f32.mrb[6].mxu0 }
 0x51f   : > { %v940_v33 = vpop.f32.mrb[7].mxu0 }
 0x524   : > { %v627_v35 = vpop.f32.mrb[8].mxu0 }
 0x525   : > { %750 = vrot.lane.b32.xlu1 %v627_v35, %s1046_s11  ;;  %v951_v0 = vpop.f32.mrb[9].mxu0 }
 0x526   : > { %v630_v36 = vpop.f32.mrb[10].mxu0 }
 0x527   : > { %v952_v37 = vpop.f32.mrb[11].mxu0 }
 0x550   : > { %v739_v38 = vpop.f32.mrb[12].mxu0 }
 0x551   : > { %754 = vrot.lane.b32.xlu0 %v739_v38, %s1047_s12  ;;  %v963_v39 = vpop.f32.mrb[13].mxu0 }
 0x552   : > { %v742_v40 = vpop.f32.mrb[14].mxu0 }
 0x553   : > { %v964_v41 = vpop.f32.mrb[15].mxu0 }
 0x58f   : > { %v747_v42 = vpop.permute.xlu0 %746 }
 0x590   : > { %v757_v44 = vsel %vm292_vm1, %v1152_v34, %v747_v42 }
 0x597   : > { %v751_v43 = vpop.permute.xlu1 %750 }
 0x598   : > { %v759_v45 = vsel %vm758_vm4, %v757_v44, %v751_v43 }
 0x5c3   : > { %v755_v46 = vpop.permute.xlu0 %754 }
 0x5c4   : > { %v761_v47 = vsel %vm760_vm5, %v759_v45, %v755_v46 }
 0x5c5   : > { %v762_v48 = vpack.c.bf16 %v761_v47, %v761_v47 }
 0x5c7   : > { %764 = vst.msk [vmem:[%s285_s15] sm:$0xf] %vm763_vm6, %v762_v48 }
 0x5c8 PF: > { %s14_s17 = sadd.s32 1, %s1038_s17   ;;  %s1203_s15 = smov %s1034_s16 }
 0x5c9   : > { %p11_p5 = scmp.ge.s32.totalorder %s14_s17, 4   ;;  %s1204_s16 = smov %s1206_s18 }
 0x5cb   :  { %13 = sbr.rel (!%p11_p5) target bundleno = 2 (0x2), region = 75 }

// kernel: transformer_forward.55
= control target key start
LH: loop header
LB: loop body
LE: loop exit
PB: predicated region body
PF: predicated region fallthrough
CT: control target
= control target key end

     0   :  { %vm16_vm0 = vcmask 261120   ;;  %s118_s0 = inlined_call_operand.vmem [shape: f32[16,32], index: 0, kind: input, shape index: {}]   ;;  %s119_s1 = inlined_call_operand.vmem [shape: f32[1,32], index: 1, kind: input, shape index: {}]   ;;  %s120_s2 = inlined_call_operand.vmem [shape: f32[1,32], index: 2, kind: input, shape index: {}]   ;;  %s121_s3 = inlined_call_operand.vmem [shape: f32[16,32], index: 3, kind: output, shape index: {}]  }
   0x1   :  { %v14_v0 = vld [vmem:[%s118_s0] sm:$0xff]  ;;  %v15_v1 = vld [vmem:[%s118_s0 + $0x8] sm:$0xff] }
   0x2   :  { %v17_v2 = vsel %vm16_vm0, %v14_v0, 0.0  ;;  %v20_v3 = vsel %vm16_vm0, %v15_v1, 0.0  ;;  %v68_v21 = vld [vmem:[%s119_s1] ss:$0 sm:$0xff] }
   0x3   :  { %18 = vadd.xlane.f32.xlu0 %v17_v2  ;;  %v69_v23 = vld [vmem:[%s120_s2] ss:$0 sm:$0xff] }
   0x7   :  { %21 = vadd.xlane.f32.xlu0 %v20_v3 }
  0x90   :  { %v19_v4 = vpop.xlane.xlu0 %18 }
  0x91   :  { %v24_v5 = vmul.f32 0.03125, %v19_v4 }
  0x93   :  { %v26_v6 = vsub.f32 %v14_v0, %v24_v5 }
  0x94   :  { %v22_v7 = vpop.xlane.xlu0 %21 }
  0x95   :  { %v25_v8 = vmul.f32 0.03125, %v22_v7  ;;  %v28_v9 = vmul.f32 %v26_v6, %v26_v6 }
  0x97   :  { %v27_v10 = vsub.f32 %v15_v1, %v25_v8  ;;  %v30_v11 = vsel %vm16_vm0, %v28_v9, 0.0 }
  0x98   :  { %31 = vadd.xlane.f32.xlu1 %v30_v11 }
  0x99   :  { %v29_v12 = vmul.f32 %v27_v10, %v27_v10 }
  0x9b   :  { %v33_v13 = vsel %vm16_vm0, %v29_v12, 0.0 }
  0x9c   :  { %34 = vadd.xlane.f32.xlu1 %v33_v13 }
 0x125   :  { %v32_v14 = vpop.xlane.xlu1 %31 }
 0x126   :  { %v36_v15 = vmul.f32 0.03125, %v32_v14 }
 0x128   :  { %v38_v16 = vadd.f32 1e-06, %v36_v15 }
 0x129   :  { %v35_v17 = vpop.xlane.xlu1 %34 }
 0x12a   :  { %70 = vrsqrt.f32 %v38_v16  ;;  %v37_v18 = vmul.f32 0.03125, %v35_v17 }
 0x12c   :  { %v39_v19 = vadd.f32 1e-06, %v37_v18 }
 0x12e   :  { %72 = vrsqrt.f32 %v39_v19 }
 0x134   :  { %v71_v20 = vpop.eup %70 }
 0x135   :  { %v42_v22 = vmul.f32 %v71_v20, %v26_v6 }
 0x137   :  { %v51_v24 = vmul.f32 %v68_v21, %v42_v22 }
 0x138   :  { %v73_v25 = vpop.eup %72 }
 0x139   :  { %v60_v26 = vadd.f32 %v69_v23, %v51_v24  ;;  %v43_v27 = vmul.f32 %v73_v25, %v27_v10 }
 0x13b   :  { %62 = vst.msk [vmem:[%s121_s3] sm:$0xff] %vm16_vm0, %v60_v26  ;;  %v52_v28 = vmul.f32 %v68_v21, %v43_v27 }
 0x13d   :  { %v61_v29 = vadd.f32 %v69_v23, %v52_v28 }
 0x13f   :  { %63 = vst.msk [vmem:[%s121_s3 + $0x8] sm:$0xff] %vm16_vm0, %v61_v29 }

// kernel: transformer_forward.62
= control target key start
LH: loop header
LB: loop body
LE: loop exit
PB: predicated region body
PF: predicated region fallthrough
CT: control target
= control target key end

     0   :  { %vm19_vm0 = vcmask 523264   ;;  %v151_v0 = vmov 0.0   ;;  %vm152_vm1 = vmmov 0   ;;  %vm47_vm2 = vcmask 261120   ;;  %s195_s1 = inlined_call_operand.vmem [shape: bf16[32,64], index: 1, kind: input, shape index: {}]   ;;  %s196_s0 = inlined_call_operand.vmem [shape: bf16[16,32], index: 0, kind: input, shape index: {}]   ;;  %s197_s2 = inlined_call_operand.vmem [shape: f32[1,64], index: 2, kind: input, shape index: {}]   ;;  %s198_s3 = inlined_call_operand.vmem [shape: bf16[16,64], index: 3, kind: output, shape index: {}]  }
   0x1   :  { %138 = vmatprep.subr.bf16.mxu0 %v151_v0  ;;  %v148_v1 = vld [vmem:[%s195_s1] sm:$0xff]   ;;  %142 = vmatprep.mubr.msk.bf16.mxu0 %vm152_vm1, %v151_v0  ;;  %20 = vst.msk [vmem:[#allocation2] sm:$0xff] %vm19_vm0, %v151_v0  ;;  %21 = vst.msk [vmem:[#allocation2 + $0x8] sm:$0xff] %vm19_vm0, %v151_v0  ;;  %v149_v2 = vld [vmem:[%s195_s1 + $0x8] sm:$0xff]   ;;  %vm119_vm3 = vcmask 519168  }
   0x2   :  { %139 = vmatpush3.bf16.msra.mxu0 %v148_v1  ;;  %v150_v3 = vld [vmem:[%s196_s0] sm:$0xff]  }
   0x3   :  { %140 = vmatprep.subr.bf16.mxu0 %v151_v0  ;;  %v130_v12 = vld [vmem:[%s197_s2] ss:$0 sm:$0xff] }
   0x6   :  { %141 = vmatpush3.bf16.msra.mxu0 %v149_v2 }
   0x8   :  { %v22_v4 = vld [vmem:[#allocation2] sm:$0xff]  ;;  %v23_v6 = vld [vmem:[#allocation2 + $0x8] sm:$0xff] }
   0x9   :  { %143 = vmatmul.mubr.msk.bf16.vlgmr.msra.gmra.mrb[0].mxu0 %vm47_vm2, %v150_v3 }
  0xdc   :  { %v85_v5 = vpop.f32.mrb[0].mxu0 }
  0xdd   :  { %v92_v7 = vadd.f32 %v85_v5, %v22_v4  ;;  %v144_v8 = vpop.f32.mrb[1].mxu0 }
  0xde   :  { %v88_v9 = vpop.f32.mrb[2].mxu0 }
  0xdf   :  { %95 = vst.msk [vmem:[#allocation2] sm:$0xff] %vm19_vm0, %v92_v7  ;;  %v93_v10 = vadd.f32 %v88_v9, %v23_v6  ;;  %v145_v11 = vpop.f32.mrb[3].mxu0 }
  0xe1   :  { %96 = vst.msk [vmem:[#allocation2 + $0x8] sm:$0xff] %vm19_vm0, %v93_v10 }
  0xe6   :  { %v100_v13 = vld [vmem:[#allocation2] sm:$0xff] }
  0xe7   :  { %v109_v14 = vadd.f32 %v130_v12, %v100_v13 }
  0xe8   :  { %v101_v15 = vld [vmem:[#allocation2 + $0x8] sm:$0xff] }
  0xe9   :  { %v133_v16 = vpack.c.bf16 %v109_v14, %v109_v14  ;;  %v110_v17 = vadd.f32 %v130_v12, %v101_v15 }
  0xeb   :  { %120 = vst.msk [vmem:[%s198_s3] sm:$0xf] %vm119_vm3, %v133_v16  ;;  %v134_v18 = vpack.c.bf16 %v110_v17, %v110_v17 }
  0xed   :  { %121 = vst.msk [vmem:[%s198_s3 + $0x4] sm:$0xf] %vm119_vm3, %v134_v18 }

// kernel: transformer_forward.47
= control target key start
LH: loop header
LB: loop body
LE: loop exit
PB: predicated region body
PF: predicated region fallthrough
CT: control target
= control target key end

     0   :  { %vm22_vm0 = vcmask 261120   ;;  %v171_v0 = vmov 0.0   ;;  %vm172_vm1 = vmmov 0   ;;  %vm66_vm2 = vcmask 523264   ;;  %s234_s1 = inlined_call_operand.vmem [shape: bf16[64,32], index: 1, kind: input, shape index: {}]   ;;  %s235_s0 = inlined_call_operand.vmem [shape: bf16[16,64], index: 0, kind: input, shape index: {}]   ;;  %s236_s2 = inlined_call_operand.vmem [shape: f32[1,32], index: 2, kind: input, shape index: {}]   ;;  %s237_s3 = inlined_call_operand.vmem [shape: f32[16,32], index: 3, kind: input, shape index: {}]   ;;  %s238_s4 = inlined_call_operand.vmem [shape: f32[16,32], index: 4, kind: output, shape index: {}]  }
   0x1   :  { %152 = vmatprep.subr.bf16.mxu0 %v171_v0  ;;  %v166_v1 = vld [vmem:[%s234_s1] sm:$0xff]   ;;  %160 = vmatprep.mubr.msk.bf16.mxu0 %vm172_vm1, %v171_v0  ;;  %23 = vst.msk [vmem:[#allocation2] sm:$0xff] %vm22_vm0, %v171_v0  ;;  %24 = vst.msk [vmem:[#allocation2 + $0x8] sm:$0xff] %vm22_vm0, %v171_v0  ;;  %v167_v2 = vld [vmem:[%s234_s1 + $0x8] sm:$0xff]  }
   0x2   :  { %153 = vmatpush3.bf16.msra.mxu0 %v166_v1  ;;  %v168_v3 = vld [vmem:[%s234_s1 + $0x10] sm:$0xff]   ;;  %v169_v4 = vld [vmem:[%s234_s1 + $0x18] sm:$0xff]   ;;  %v170_v5 = vld [vmem:[%s235_s0] sm:$0xff]  }
   0x3   :  { %154 = vmatprep.subr.bf16.mxu0 %v171_v0  ;;  %v146_v14 = vld [vmem:[%s236_s2] ss:$0 sm:$0xff]  ;;  %v131_v18 = vld [vmem:[%s237_s3 + $0x8] sm:$0xff] }
   0x4   :  { %v130_v16 = vld [vmem:[%s237_s3] sm:$0xff] }
   0x6   :  { %155 = vmatpush3.bf16.msra.mxu0 %v167_v2 }
   0x7   :  { %156 = vmatprep.subr.bf16.mxu0 %v171_v0 }
   0x8   :  { %v25_v6 = vld [vmem:[#allocation2] sm:$0xff]  ;;  %v26_v8 = vld [vmem:[#allocation2 + $0x8] sm:$0xff] }
   0xa   :  { %157 = vmatpush3.bf16.msra.mxu0 %v168_v3 }
   0xb   :  { %158 = vmatprep.subr.bf16.mxu0 %v171_v0 }
   0xe   :  { %159 = vmatpush3.bf16.msra.mxu0 %v169_v4 }
  0x11   :  { %161 = vmatmul.mubr.msk.bf16.vlgmr.msra.gmra.mrb[0].mxu0 %vm66_vm2, %v170_v5 }
  0xe4   :  { %v104_v7 = vpop.f32.mrb[0].mxu0 }
  0xe5   :  { %v111_v9 = vadd.f32 %v104_v7, %v25_v6  ;;  %v162_v10 = vpop.f32.mrb[1].mxu0 }
  0xe6   :  { %v107_v11 = vpop.f32.mrb[2].mxu0 }
  0xe7   :  { %114 = vst.msk [vmem:[#allocation2] sm:$0xff] %vm22_vm0, %v111_v9  ;;  %v112_v12 = vadd.f32 %v107_v11, %v26_v8  ;;  %v163_v13 = vpop.f32.mrb[3].mxu0 }
  0xe9   :  { %115 = vst.msk [vmem:[#allocation2 + $0x8] sm:$0xff] %vm22_vm0, %v112_v12 }
  0xee   :  { %v119_v15 = vld [vmem:[#allocation2] sm:$0xff] }
  0xef   :  { %v128_v17 = vadd.f32 %v146_v14, %v119_v15 }
  0xf0   :  { %v120_v19 = vld [vmem:[#allocation2 + $0x8] sm:$0xff] }
  0xf1   :  { %v132_v20 = vadd.f32 %v130_v16, %v128_v17  ;;  %v129_v21 = vadd.f32 %v146_v14, %v120_v19 }
  0xf3   :  { %134 = vst.msk [vmem:[%s238_s4] sm:$0xff] %vm22_vm0, %v132_v20  ;;  %v133_v22 = vadd.f32 %v131_v18, %v129_v21 }
  0xf5   :  { %135 = vst.msk [vmem:[%s238_s4 + $0x8] sm:$0xff] %vm22_vm0, %v133_v22 }

// kernel: transformer_forward.46
= control target key start
LH: loop header
LB: loop body
LE: loop exit
PB: predicated region body
PF: predicated region fallthrough
CT: control target
= control target key end

     0   :  { %vm19_vm0 = vcmask 523264   ;;  %v153_v0 = vmov 0.0   ;;  %vm154_vm1 = vmmov 0   ;;  %vm47_vm2 = vcmask 261120   ;;  %s197_s1 = inlined_call_operand.vmem [shape: bf16[32,64], index: 1, kind: input, shape index: {}]   ;;  %s198_s0 = inlined_call_operand.vmem [shape: bf16[16,32], index: 0, kind: input, shape index: {}]   ;;  %s199_s2 = inlined_call_operand.vmem [shape: f32[1,64], index: 2, kind: input, shape index: {}]   ;;  %s200_s3 = inlined_call_operand.vmem [shape: bf16[16,64], index: 3, kind: output, shape index: {}]  }
   0x1   :  { %140 = vmatprep.subr.bf16.mxu0 %v153_v0  ;;  %v150_v1 = vld [vmem:[%s197_s1] sm:$0xff]   ;;  %144 = vmatprep.mubr.msk.bf16.mxu0 %vm154_vm1, %v153_v0  ;;  %20 = vst.msk [vmem:[#allocation2] sm:$0xff] %vm19_vm0, %v153_v0  ;;  %21 = vst.msk [vmem:[#allocation2 + $0x8] sm:$0xff] %vm19_vm0, %v153_v0  ;;  %v151_v2 = vld [vmem:[%s197_s1 + $0x8] sm:$0xff]   ;;  %vm121_vm3 = vcmask 519168  }
   0x2   :  { %141 = vmatpush3.bf16.msra.mxu0 %v150_v1  ;;  %v152_v3 = vld [vmem:[%s198_s0] sm:$0xff]  }
   0x3   :  { %142 = vmatprep.subr.bf16.mxu0 %v153_v0  ;;  %v132_v12 = vld [vmem:[%s199_s2] ss:$0 sm:$0xff] }
   0x6   :  { %143 = vmatpush3.bf16.msra.mxu0 %v151_v2 }
   0x8   :  { %v22_v4 = vld [vmem:[#allocation2] sm:$0xff]  ;;  %v23_v6 = vld [vmem:[#allocation2 + $0x8] sm:$0xff] }
   0x9   :  { %145 = vmatmul.mubr.msk.bf16.vlgmr.msra.gmra.mrb[0].mxu0 %vm47_vm2, %v152_v3 }
  0xdc   :  { %v85_v5 = vpop.f32.mrb[0].mxu0 }
  0xdd   :  { %v92_v7 = vadd.f32 %v85_v5, %v22_v4  ;;  %v146_v8 = vpop.f32.mrb[1].mxu0 }
  0xde   :  { %v88_v9 = vpop.f32.mrb[2].mxu0 }
  0xdf   :  { %95 = vst.msk [vmem:[#allocation2] sm:$0xff] %vm19_vm0, %v92_v7  ;;  %v93_v10 = vadd.f32 %v88_v9, %v23_v6  ;;  %v147_v11 = vpop.f32.mrb[3].mxu0 }
  0xe1   :  { %96 = vst.msk [vmem:[#allocation2 + $0x8] sm:$0xff] %vm19_vm0, %v93_v10 }
  0xe6   :  { %v100_v13 = vld [vmem:[#allocation2] sm:$0xff] }
  0xe7   :  { %v109_v14 = vadd.f32 %v132_v12, %v100_v13 }
  0xe8   :  { %v101_v15 = vld [vmem:[#allocation2 + $0x8] sm:$0xff] }
  0xe9   :  { %v111_v16 = vmax.f32 %v109_v14, 0.0  ;;  %v110_v17 = vadd.f32 %v132_v12, %v101_v15 }
  0xeb   :  { %v135_v18 = vpack.c.bf16 %v111_v16, %v111_v16  ;;  %v112_v19 = vmax.f32 %v110_v17, 0.0 }
  0xed   :  { %122 = vst.msk [vmem:[%s200_s3] sm:$0xf] %vm121_vm3, %v135_v18  ;;  %v136_v20 = vpack.c.bf16 %v112_v19, %v112_v19 }
  0xef   :  { %123 = vst.msk [vmem:[%s200_s3 + $0x4] sm:$0xf] %vm121_vm3, %v136_v20 }

// kernel: transformer_forward.61
= control target key start
LH: loop header
LB: loop body
LE: loop exit
PB: predicated region body
PF: predicated region fallthrough
CT: control target
= control target key end

     0   :  { %vm19_vm0 = vcmask 261120   ;;  %v150_v0 = vmov 0.0   ;;  %vm151_vm1 = vmmov 0   ;;  %vm118_vm2 = vcmask 257024   ;;  %s195_s1 = inlined_call_operand.vmem [shape: bf16[32,32], index: 1, kind: input, shape index: {}]   ;;  %s196_s0 = inlined_call_operand.vmem [shape: bf16[16,32], index: 0, kind: input, shape index: {}]   ;;  %s197_s2 = inlined_call_operand.vmem [shape: f32[1,32], index: 2, kind: input, shape index: {}]   ;;  %s198_s3 = inlined_call_operand.vmem [shape: bf16[16,32], index: 3, kind: output, shape index: {}]  }
   0x1   :  { %137 = vmatprep.subr.bf16.mxu0 %v150_v0  ;;  %v147_v1 = vld [vmem:[%s195_s1] sm:$0xff]   ;;  %141 = vmatprep.mubr.msk.bf16.mxu0 %vm151_vm1, %v150_v0  ;;  %20 = vst.msk [vmem:[#allocation2] sm:$0xff] %vm19_vm0, %v150_v0  ;;  %21 = vst.msk [vmem:[#allocation2 + $0x8] sm:$0xff] %vm19_vm0, %v150_v0  ;;  %v148_v2 = vld [vmem:[%s195_s1 + $0x8] sm:$0xff]  }
   0x2   :  { %138 = vmatpush3.bf16.msra.mxu0 %v147_v1  ;;  %v149_v3 = vld [vmem:[%s196_s0] sm:$0xff]  }
   0x3   :  { %139 = vmatprep.subr.bf16.mxu0 %v150_v0  ;;  %v129_v12 = vld [vmem:[%s197_s2] ss:$0 sm:$0xff] }
   0x6   :  { %140 = vmatpush3.bf16.msra.mxu0 %v148_v2 }
   0x8   :  { %v22_v4 = vld [vmem:[#allocation2] sm:$0xff]  ;;  %v23_v6 = vld [vmem:[#allocation2 + $0x8] sm:$0xff] }
   0x9   :  { %142 = vmatmul.mubr.msk.bf16.vlgmr.msra.gmra.mrb[0].mxu0 %vm19_vm0, %v149_v3 }
  0xdc   :  { %v85_v5 = vpop.f32.mrb[0].mxu0 }
  0xdd   :  { %v92_v7 = vadd.f32 %v85_v5, %v22_v4  ;;  %v143_v8 = vpop.f32.mrb[1].mxu0 }
  0xde   :  { %v88_v9 = vpop.f32.mrb[2].mxu0 }
  0xdf   :  { %94 = vst.msk [vmem:[#allocation2] sm:$0xff] %vm19_vm0, %v92_v7  ;;  %v93_v10 = vadd.f32 %v88_v9, %v23_v6  ;;  %v144_v11 = vpop.f32.mrb[3].mxu0 }
  0xe1   :  { %95 = vst.msk [vmem:[#allocation2 + $0x8] sm:$0xff] %vm19_vm0, %v93_v10 }
  0xe6   :  { %v99_v13 = vld [vmem:[#allocation2] sm:$0xff] }
  0xe7   :  { %v108_v14 = vadd.f32 %v129_v12, %v99_v13 }
  0xe8   :  { %v100_v15 = vld [vmem:[#allocation2 + $0x8] sm:$0xff] }
  0xe9   :  { %v132_v16 = vpack.c.bf16 %v108_v14, %v108_v14  ;;  %v109_v17 = vadd.f32 %v129_v12, %v100_v15 }
  0xeb   :  { %119 = vst.msk [vmem:[%s198_s3] sm:$0xf] %vm118_vm2, %v132_v16  ;;  %v133_v18 = vpack.c.bf16 %v109_v17, %v109_v17 }
  0xed   :  { %120 = vst.msk [vmem:[%s198_s3 + $0x4] sm:$0xf] %vm118_vm2, %v133_v18 }

// kernel: transformer_forward.81
= control target key start
LH: loop header
LB: loop body
LE: loop exit
PB: predicated region body
PF: predicated region fallthrough
CT: control target
= control target key end

     0   :  { %v178_v1 = vmov 0.0   ;;  %vm179_vm0 = vmmov 0   ;;  %vm20_vm1 = vcmask 523264   ;;  %s233_s0 = inlined_call_operand.vmem [shape: bf16[16,32], index: 0, kind: input, shape index: {}]   ;;  %s234_s1 = inlined_call_operand.vmem [shape: bf16[32,64], index: 1, kind: input, shape index: {}]   ;;  %s235_s2 = inlined_call_operand.vmem [shape: f32[1,64], index: 2, kind: input, shape index: {}]   ;;  %s236_s3 = inlined_call_operand.hbm [shape: f32[16,64], index: 3, kind: output, shape index: {}]  }
   0x1   :  { %v151_v0 = vld [vmem:[%s234_s1] sm:$0xff]   ;;  %138 = vmatprep.subr.bf16.mxu0 %v178_v1  ;;  %v152_v2 = vld [vmem:[%s234_s1 + $0x8] sm:$0xff]   ;;  %142 = vmatprep.mubr.msk.bf16.mxu0 %vm179_vm0, %v178_v1 }
   0x2   :  { %139 = vmatpush3.bf16.msra.mxu0 %v151_v0 }
   0x3   :  { %140 = vmatprep.subr.bf16.mxu0 %v178_v1 }
   0x4   :  { %8 = vsyncpa [#allocation4], 0  ;;  %21 = vst.msk [vmem:[#allocation2] sm:$0xff] %vm20_vm1, %v178_v1  ;;  %v153_v3 = vld [vmem:[%s233_s0] sm:$0xff]   ;;  %vm48_vm2 = vcmask 261120   ;;  %s180_s0 = smov [#allocation3]  }
   0x5   :  { %22 = vst.msk [vmem:[#allocation2 + $0x8] sm:$0xff] %vm20_vm1, %v178_v1  ;;  %v134_v12 = vld [vmem:[%s235_s2] ss:$0 sm:$0xff]  ;;  %s119_s19 = sshll.u32 %s180_s0, 4  ;;  %s120_s19 = int_to_ptr.vmem [resolvable:$true] %s119_s19 }
   0x6   :  { %141 = vmatpush3.bf16.msra.mxu0 %v152_v2  ;;  %s154_s20 = scalar_lea.vmem %s120_s19, 256  ;;  %p159_p1 = scmp.lt.s32.totalorder %s120_s19, %s120_s19 }
   0x7   :  { %p155_p0 = scmp.ne.s32.totalorder %s120_s19, %s154_s20  ;;  %p160_p2 = scmp.lt.s32.totalorder %s154_s20, %s154_s20 }
   0x9   :  { %143 = vmatmul.mubr.msk.bf16.vlgmr.msra.gmra.mrb[0].mxu0 %vm48_vm2, %v153_v3  ;;  %p161_p3 = por %p160_p2, %p159_p1 }
   0xb   :  { %v23_v4 = vld [vmem:[#allocation2] sm:$0xff]  ;;  %p162_p4 = pnand %p161_p3, %p155_p0 }
   0xc   :  { %v24_v6 = vld [vmem:[#allocation2 + $0x8] sm:$0xff] }
  0xdc   :  { %v86_v5 = vpop.f32.mrb[0].mxu0 }
  0xdd   :  { %v93_v7 = vadd.f32 %v86_v5, %v23_v4  ;;  %v144_v8 = vpop.f32.mrb[1].mxu0 }
  0xde   :  { %v89_v9 = vpop.f32.mrb[2].mxu0 }
  0xdf   :  { %96 = vst.msk [vmem:[#allocation2] sm:$0xff] %vm20_vm1, %v93_v7  ;;  %v94_v10 = vadd.f32 %v89_v9, %v24_v6  ;;  %v145_v11 = vpop.f32.mrb[3].mxu0 }
  0xe1   :  { %97 = vst.msk [vmem:[#allocation2 + $0x8] sm:$0xff] %vm20_vm1, %v94_v10 }
  0xe6   :  { %v101_v13 = vld [vmem:[#allocation2] sm:$0xff] }
  0xe7   :  { %v110_v14 = vadd.f32 %v134_v12, %v101_v13 }
  0xe8   :  { %v102_v15 = vld [vmem:[#allocation2 + $0x8] sm:$0xff] }
  0xe9   :  { %v111_v16 = vadd.f32 %v134_v12, %v102_v15  ;;  %112 = vst.msk [vmem:[#allocation3] sm:$0xff] %vm20_vm1, %v110_v14 }
  0xeb   :  { %113 = vst.msk [vmem:[#allocation3 + $0x8] sm:$0xff] %vm20_vm1, %v111_v16 }
  0xec   :  { %165 = shalt.err (!%p162_p4)
}
  0xed   :  { %s166_s22 = scalar_lea.hbm %s236_s3, 256 }
  0xee   :  { %p167_p5 = scmp.ne.s32.totalorder %s236_s3, %s166_s22  ;;  %p170_p6 = scmp.lt.u32.totalorder %s166_s22, %s236_s3 }
  0xf0   :  { %p172_p7 = pnand %p170_p6, %p167_p5 }
  0xf2   :  { %175 = shalt.err (!%p172_p7)
}
  0xf3   :  { %s181_s27 = smov 128   ;;  %s182_s28 = smov 8  }
  0xf4   :  { %125 = dma.vmem_to_hbm [thread:$0]  %s120_s19, 256, %s236_s3, [#allocation4], %s181_s27, %s181_s27, %s182_s28  }
  0xf5   :  { %176 = dma.done.wait [#allocation4], 256  }
  0xf6   :  { %177 = vsyncadd [#allocation4], 4294967040 }
  0xf7   :  { %129 = vsyncpa [#allocation4], 1 }

</bundles_post_ra>
